<compile_context>
chip_gen: v7x
topology: tpu7x:2x2x1
jax: 0.10.0
libtpu: 0.0.40
codegen_flags: <defaults>
</compile_context>

<pallas_src>
import math

import jax
import jax.numpy as jnp
from jax.experimental import pallas as pl
from jax.experimental.pallas import tpu as pltpu

SPLIT = 8  # torch.split(q, 8, dim=-1): chunk width fixed by the reference module


# ------------------------------------------------------------------ kernel ----
def _transform_attention_kernel(x_ref, sh_ref, sp_ref, coef_ref, bo_ref, o_ref):
    """One (batch, N-tile) grid step.

    Blocks:
      x_ref, sh_ref : (1, Th, TN)   value / historical STE scalars, N on lanes
      sp_ref        : (1, Tp, TN)   prediction STE scalars, N on lanes
      coef_ref      : SMEM (6, H)   per-head folded coefficients (see wrapper)
      bo_ref        : SMEM (1,)     output-projection bias
      o_ref         : (1, Tp, TN)
    """
    x = x_ref[0].astype(jnp.float32)     # (Th, TN)
    sh = sh_ref[0].astype(jnp.float32)   # (Th, TN)
    sp = sp_ref[0].astype(jnp.float32)   # (Tp, TN)
    H = coef_ref.shape[1]                # static: d_model // 8

    out = jnp.zeros(sp.shape, jnp.float32)          # (Tp, TN)
    for h in range(H):                               # small, static unroll
        alpha = coef_ref[0, h]                       # SMEM scalar reads
        beta = coef_ref[1, h]
        gamma = coef_ref[2, h]
        delta = coef_ref[3, h]
        va = coef_ref[4, h]
        vb = coef_ref[5, h]

        # scores s[k,t,n] = alpha*sh[k,n]*sp[t,n] + beta*sp[t,n] + gamma*sh[k,n] + delta
        u = alpha * sh + beta                        # (Th, TN)
        w = gamma * sh + delta                       # (Th, TN)
        s = u[:, None, :] * sp[None, :, :] + w[:, None, :]      # (Th, Tp, TN)

        # softmax over the key/time axis (leading dim -> elementwise VPU reduce)
        m = jnp.max(s, axis=0)                       # (Tp, TN)
        p = jnp.exp(s - m[None, :, :])               # (Th, Tp, TN)  (EUP)
        denom = jnp.sum(p, axis=0)                   # (Tp, TN)

        # p @ v with the v-projection and Linear(d_model,1) folded per head:
        #   vbar[k,n] = sum_c wo[h,c]*(x[k,n]*wv[h,c] + bv[h,c]) = va*x + vb
        vbar = va * x + vb                           # (Th, TN)
        num = jnp.sum(p * vbar[:, None, :], axis=0)  # (Tp, TN)

        out = out + num * pl.reciprocal(denom, approx=False)

    o_ref[0] = (out + bo_ref[0]).astype(o_ref.dtype)  # lane-dense (Tp, TN) store


# ----------------------------------------------------------------- wrapper ----
def _pick_tile_n(N, B):
    """Lane-dense N tile: multiple of 128 when possible, >=2 grid blocks if we can."""
    if N % 128 != 0:
        return N  # full-extent block (allowed by the (8,128) rule)
    for t in (2048, 1024, 512, 256, 128):
        if N % t == 0 and (N // t) * B >= 2:
            return t
    return N


def transform_attention(x, ste_his, ste_pred, params, *, heads, d_model, tile_n=None):
    """x, ste_his: (B, T_his, N); ste_pred: (B, T_pred, N)  ->  (B, T_pred, N)."""
    B, Th, N = x.shape
    Tp = ste_pred.shape[1]
    assert ste_his.shape == (B, Th, N) and ste_pred.shape == (B, Tp, N)
    assert d_model % SPLIT == 0, "d_model must be a multiple of 8 (torch.split(.., 8))"
    assert d_model % heads == 0, "heads must divide d_model"
    H = d_model // SPLIT
    C = SPLIT
    scale = 1.0 / math.sqrt(d_model // heads)

    # Host-side folding of the tiny (d_model,) weight vectors into 6 scalars per
    # 8-wide chunk (exact algebra, see header).  This is free layout plumbing.
    f32 = jnp.float32
    wq = params["wq"].astype(f32).reshape(H, C)
    bq = params["bq"].astype(f32).reshape(H, C)
    wk = params["wk"].astype(f32).reshape(H, C)
    bk = params["bk"].astype(f32).reshape(H, C)
    wv = params["wv"].astype(f32).reshape(H, C)
    bv = params["bv"].astype(f32).reshape(H, C)
    wo = params["wo"].astype(f32).reshape(H, C)
    bo = params["bo"].astype(f32).reshape(1)

    coef = jnp.stack(
        [
            scale * jnp.sum(wq * wk, axis=1),   # alpha
            scale * jnp.sum(wq * bk, axis=1),   # beta
            scale * jnp.sum(bq * wk, axis=1),   # gamma
            scale * jnp.sum(bq * bk, axis=1),   # delta
            jnp.sum(wv * wo, axis=1),           # A  (v-weight . out-weight)
            jnp.sum(bv * wo, axis=1),           # B  (v-bias   . out-weight)
        ],
        axis=0,
    )  # (6, H) float32

    if tile_n is None:
        tile_n = _pick_tile_n(N, B)
    assert N % tile_n == 0, "N must be divisible by tile_n"
    grid = (B, N // tile_n)

    def tiled(T):
        return pl.BlockSpec((1, T, tile_n), lambda b, n: (b, 0, n))

    smem_spec = pl.BlockSpec(memory_space=pltpu.MemorySpace.SMEM)

    return pl.pallas_call(
        _transform_attention_kernel,
        out_shape=jax.ShapeDtypeStruct((B, Tp, N), x.dtype),
        grid=grid,
        in_specs=[tiled(Th), tiled(Th), tiled(Tp), smem_spec, smem_spec],
        out_specs=tiled(Tp),
        compiler_params=pltpu.CompilerParams(
            dimension_semantics=("parallel", "parallel")),
    )(x, ste_his, ste_pred, coef, bo)


# ------------------------------------------------------- deterministic init ---
def init_params(key, d_model):
    """torch-like init: Linear(1, d_model) -> U(-1,1); Linear(d_model, 1) -> U(+-1/sqrt(D))."""
    ks = jax.random.split(key, 8)
    u = lambda k, shp, s: jax.random.uniform(k, shp, jnp.float32, -s, s)
    so = 1.0 / math.sqrt(d_model)
    return dict(
        wq=u(ks[0], (d_model,), 1.0), bq=u(ks[1], (d_model,), 1.0),
        wk=u(ks[2], (d_model,), 1.0), bk=u(ks[3], (d_model,), 1.0),
        wv=u(ks[4], (d_model,), 1.0), bv=u(ks[5], (d_model,), 1.0),
        wo=u(ks[6], (d_model,), so), bo=u(ks[7], (1,), so),
    )


# -------------------------------------------------------- pure-JAX reference --
def transform_attention_ref(x, ste_his, ste_pred, params, *, heads, d_model):
    """Step-by-step mirror of TransformAttention.forward (torch semantics)."""
    hdim = d_model // heads
    H = d_model // SPLIT
    q = ste_pred[..., None] * params["wq"] + params["bq"]   # (B, Tp, N, D)
    k = ste_his[..., None] * params["wk"] + params["bk"]
    v = x[..., None] * params["wv"] + params["bv"]
    split_cat = lambda t: jnp.concatenate(jnp.split(t, H, axis=-1), axis=0)  # (H*B, T, N, 8)
    q, k, v = split_cat(q), split_cat(k), split_cat(v)
    q = jnp.transpose(q, (0, 2, 1, 3))       # (HB, N, Tp, 8)
    kT = jnp.transpose(k, (0, 2, 3, 1))      # (HB, N, 8, Th)
    v = jnp.transpose(v, (0, 2, 1, 3))       # (HB, N, Th, 8)
    a = jnp.matmul(q, kT) / math.sqrt(hdim)
    a = jax.nn.softmax(a, axis=-1)
    out = jnp.matmul(a, v)                   # (HB, N, Tp, 8)
    out = jnp.transpose(out, (0, 2, 1, 3))   # (HB, Tp, N, 8)
    out = jnp.concatenate(jnp.split(out, H, axis=0), axis=-1)  # (B, Tp, N, D)
    return jnp.sum(out * params["wo"], axis=-1) + params["bo"][0]  # (B, Tp, N)


# --------------------------------------------------------------------- main ---
if __name__ == "__main__":
    key = jax.random.PRNGKey(0)
    B, T_HIS, T_PRED, N = 2, 8, 8, 16
    HEADS, D_MODEL = 4, 32            # hdim = d_model // heads = 8 == split width

    kx, kh, kp, kw = jax.random.split(key, 4)
    x = jax.random.normal(kx, (B, T_HIS, N), jnp.float32)
    ste_his = jax.random.normal(kh, (B, T_HIS, N), jnp.float32)
    ste_pred = jax.random.normal(kp, (B, T_PRED, N), jnp.float32)
    params = init_params(kw, D_MODEL)

    out = transform_attention(x, ste_his, ste_pred, params,
                              heads=HEADS, d_model=D_MODEL)
    out = jax.block_until_ready(out)

    ref = transform_attention_ref(x, ste_his, ste_pred, params,
                                  heads=HEADS, d_model=D_MODEL)
    assert out.shape == (B, T_PRED, N), out.shape
    assert bool(jnp.allclose(out, ref, atol=5e-4, rtol=5e-4)), "mismatch vs reference"
    print("KERNEL_OK")
</pallas_src>

<mosaic_0001>
module attributes {stable_mosaic.version = 11 : i64} {
  func.func @_transform_attention_kernel(%arg0: i32, %arg1: i32, %arg2: memref<1x8x16xf32, #tpu.memory_space<vmem>>, %arg3: memref<1x8x16xf32, #tpu.memory_space<vmem>>, %arg4: memref<1x8x16xf32, #tpu.memory_space<vmem>>, %arg5: memref<6x4xf32, #tpu.memory_space<smem>>, %arg6: memref<1xf32, #tpu.memory_space<smem>>, %arg7: memref<1x8x16xf32, #tpu.memory_space<vmem>>) attributes {dimension_semantics = [#tpu.dimension_semantics<parallel>, #tpu.dimension_semantics<parallel>], iteration_bounds = array<i64: 2, 1>, scalar_prefetch = 0 : i64, scratch_operands = 0 : i64, tpu.core_type = #tpu.core_type<tc>, window_params = [{transform_indices = @transform_0, window_bounds = array<i64: 1, 8, 16>}, {transform_indices = @transform_1, window_bounds = array<i64: 1, 8, 16>}, {transform_indices = @transform_2, window_bounds = array<i64: 1, 8, 16>}, {transform_indices = @transform_3, window_bounds = array<i64: 6, 4>}, {transform_indices = @transform_4, window_bounds = array<i64: 1>}, {transform_indices = @transform_5, window_bounds = array<i64: 1, 8, 16>}]} {
    %c0 = arith.constant 0 : index
    %c0_0 = arith.constant 0 : index
    %c0_1 = arith.constant 0 : index
    %0 = vector.load %arg2[%c0, %c0_0, %c0_1] : memref<1x8x16xf32, #tpu.memory_space<vmem>>, vector<1x8x16xf32>
    %1 = vector.shape_cast %0 : vector<1x8x16xf32> to vector<8x16xf32>
    %c0_2 = arith.constant 0 : index
    %c0_3 = arith.constant 0 : index
    %c0_4 = arith.constant 0 : index
    %2 = vector.load %arg3[%c0_2, %c0_3, %c0_4] : memref<1x8x16xf32, #tpu.memory_space<vmem>>, vector<1x8x16xf32>
    %3 = vector.shape_cast %2 : vector<1x8x16xf32> to vector<8x16xf32>
    %c0_5 = arith.constant 0 : index
    %c0_6 = arith.constant 0 : index
    %c0_7 = arith.constant 0 : index
    %4 = vector.load %arg4[%c0_5, %c0_6, %c0_7] : memref<1x8x16xf32, #tpu.memory_space<vmem>>, vector<1x8x16xf32>
    %5 = vector.shape_cast %4 : vector<1x8x16xf32> to vector<8x16xf32>
    %cst = arith.constant 0.000000e+00 : f32
    %6 = vector.broadcast %cst : f32 to vector<8x16xf32>
    %c0_8 = arith.constant 0 : index
    %c0_9 = arith.constant 0 : index
    %7 = memref.load %arg5[%c0_8, %c0_9] : memref<6x4xf32, #tpu.memory_space<smem>>
    %c1 = arith.constant 1 : index
    %c0_10 = arith.constant 0 : index
    %8 = memref.load %arg5[%c1, %c0_10] : memref<6x4xf32, #tpu.memory_space<smem>>
    %c2 = arith.constant 2 : index
    %c0_11 = arith.constant 0 : index
    %9 = memref.load %arg5[%c2, %c0_11] : memref<6x4xf32, #tpu.memory_space<smem>>
    %c3 = arith.constant 3 : index
    %c0_12 = arith.constant 0 : index
    %10 = memref.load %arg5[%c3, %c0_12] : memref<6x4xf32, #tpu.memory_space<smem>>
    %c4 = arith.constant 4 : index
    %c0_13 = arith.constant 0 : index
    %11 = memref.load %arg5[%c4, %c0_13] : memref<6x4xf32, #tpu.memory_space<smem>>
    %c5 = arith.constant 5 : index
    %c0_14 = arith.constant 0 : index
    %12 = memref.load %arg5[%c5, %c0_14] : memref<6x4xf32, #tpu.memory_space<smem>>
    %13 = vector.broadcast %7 : f32 to vector<8x16xf32>
    %14 = arith.mulf %13, %3 : vector<8x16xf32>
    %15 = vector.broadcast %8 : f32 to vector<8x16xf32>
    %16 = arith.addf %14, %15 : vector<8x16xf32>
    %17 = vector.broadcast %9 : f32 to vector<8x16xf32>
    %18 = arith.mulf %17, %3 : vector<8x16xf32>
    %19 = vector.broadcast %10 : f32 to vector<8x16xf32>
    %20 = arith.addf %18, %19 : vector<8x16xf32>
    %21 = vector.shape_cast %16 : vector<8x16xf32> to vector<8x1x16xf32>
    %22 = vector.shape_cast %5 : vector<8x16xf32> to vector<1x8x16xf32>
    %23 = vector.broadcast %21 : vector<8x1x16xf32> to vector<8x8x16xf32>
    %24 = vector.broadcast %22 : vector<1x8x16xf32> to vector<8x8x16xf32>
    %25 = arith.mulf %23, %24 : vector<8x8x16xf32>
    %26 = vector.shape_cast %20 : vector<8x16xf32> to vector<8x1x16xf32>
    %27 = vector.broadcast %26 : vector<8x1x16xf32> to vector<8x8x16xf32>
    %28 = arith.addf %25, %27 : vector<8x8x16xf32>
    %cst_15 = arith.constant dense<0xFF800000> : vector<8x16xf32>
    %29 = vector.multi_reduction <maximumf>, %28, %cst_15 [0] : vector<8x8x16xf32> to vector<8x16xf32>
    %30 = vector.shape_cast %29 : vector<8x16xf32> to vector<1x8x16xf32>
    %31 = vector.broadcast %30 : vector<1x8x16xf32> to vector<8x8x16xf32>
    %32 = arith.subf %28, %31 : vector<8x8x16xf32>
    %33 = math.exp %32 : vector<8x8x16xf32>
    %cst_16 = arith.constant dense<0.000000e+00> : vector<8x16xf32>
    %34 = vector.multi_reduction <add>, %33, %cst_16 [0] : vector<8x8x16xf32> to vector<8x16xf32>
    %35 = vector.broadcast %11 : f32 to vector<8x16xf32>
    %36 = arith.mulf %35, %1 : vector<8x16xf32>
    %37 = vector.broadcast %12 : f32 to vector<8x16xf32>
    %38 = arith.addf %36, %37 : vector<8x16xf32>
    %39 = vector.shape_cast %38 : vector<8x16xf32> to vector<8x1x16xf32>
    %40 = vector.broadcast %39 : vector<8x1x16xf32> to vector<8x8x16xf32>
    %41 = arith.mulf %33, %40 : vector<8x8x16xf32>
    %cst_17 = arith.constant dense<0.000000e+00> : vector<8x16xf32>
    %42 = vector.multi_reduction <add>, %41, %cst_17 [0] : vector<8x8x16xf32> to vector<8x16xf32>
    %43 = tpu.reciprocal %34 : vector<8x16xf32> -> vector<8x16xf32>
    %44 = arith.mulf %42, %43 : vector<8x16xf32>
    %45 = arith.addf %6, %44 : vector<8x16xf32>
    %c0_18 = arith.constant 0 : index
    %c1_19 = arith.constant 1 : index
    %46 = memref.load %arg5[%c0_18, %c1_19] : memref<6x4xf32, #tpu.memory_space<smem>>
    %c1_20 = arith.constant 1 : index
    %c1_21 = arith.constant 1 : index
    %47 = memref.load %arg5[%c1_20, %c1_21] : memref<6x4xf32, #tpu.memory_space<smem>>
    %c2_22 = arith.constant 2 : index
    %c1_23 = arith.constant 1 : index
    %48 = memref.load %arg5[%c2_22, %c1_23] : memref<6x4xf32, #tpu.memory_space<smem>>
    %c3_24 = arith.constant 3 : index
    %c1_25 = arith.constant 1 : index
    %49 = memref.load %arg5[%c3_24, %c1_25] : memref<6x4xf32, #tpu.memory_space<smem>>
    %c4_26 = arith.constant 4 : index
    %c1_27 = arith.constant 1 : index
    %50 = memref.load %arg5[%c4_26, %c1_27] : memref<6x4xf32, #tpu.memory_space<smem>>
    %c5_28 = arith.constant 5 : index
    %c1_29 = arith.constant 1 : index
    %51 = memref.load %arg5[%c5_28, %c1_29] : memref<6x4xf32, #tpu.memory_space<smem>>
    %52 = vector.broadcast %46 : f32 to vector<8x16xf32>
    %53 = arith.mulf %52, %3 : vector<8x16xf32>
    %54 = vector.broadcast %47 : f32 to vector<8x16xf32>
    %55 = arith.addf %53, %54 : vector<8x16xf32>
    %56 = vector.broadcast %48 : f32 to vector<8x16xf32>
    %57 = arith.mulf %56, %3 : vector<8x16xf32>
    %58 = vector.broadcast %49 : f32 to vector<8x16xf32>
    %59 = arith.addf %57, %58 : vector<8x16xf32>
    %60 = vector.shape_cast %55 : vector<8x16xf32> to vector<8x1x16xf32>
    %61 = vector.shape_cast %5 : vector<8x16xf32> to vector<1x8x16xf32>
    %62 = vector.broadcast %60 : vector<8x1x16xf32> to vector<8x8x16xf32>
    %63 = vector.broadcast %61 : vector<1x8x16xf32> to vector<8x8x16xf32>
    %64 = arith.mulf %62, %63 : vector<8x8x16xf32>
    %65 = vector.shape_cast %59 : vector<8x16xf32> to vector<8x1x16xf32>
    %66 = vector.broadcast %65 : vector<8x1x16xf32> to vector<8x8x16xf32>
    %67 = arith.addf %64, %66 : vector<8x8x16xf32>
    %cst_30 = arith.constant dense<0xFF800000> : vector<8x16xf32>
    %68 = vector.multi_reduction <maximumf>, %67, %cst_30 [0] : vector<8x8x16xf32> to vector<8x16xf32>
    %69 = vector.shape_cast %68 : vector<8x16xf32> to vector<1x8x16xf32>
    %70 = vector.broadcast %69 : vector<1x8x16xf32> to vector<8x8x16xf32>
    %71 = arith.subf %67, %70 : vector<8x8x16xf32>
    %72 = math.exp %71 : vector<8x8x16xf32>
    %cst_31 = arith.constant dense<0.000000e+00> : vector<8x16xf32>
    %73 = vector.multi_reduction <add>, %72, %cst_31 [0] : vector<8x8x16xf32> to vector<8x16xf32>
    %74 = vector.broadcast %50 : f32 to vector<8x16xf32>
    %75 = arith.mulf %74, %1 : vector<8x16xf32>
    %76 = vector.broadcast %51 : f32 to vector<8x16xf32>
    %77 = arith.addf %75, %76 : vector<8x16xf32>
    %78 = vector.shape_cast %77 : vector<8x16xf32> to vector<8x1x16xf32>
    %79 = vector.broadcast %78 : vector<8x1x16xf32> to vector<8x8x16xf32>
    %80 = arith.mulf %72, %79 : vector<8x8x16xf32>
    %cst_32 = arith.constant dense<0.000000e+00> : vector<8x16xf32>
    %81 = vector.multi_reduction <add>, %80, %cst_32 [0] : vector<8x8x16xf32> to vector<8x16xf32>
    %82 = tpu.reciprocal %73 : vector<8x16xf32> -> vector<8x16xf32>
    %83 = arith.mulf %81, %82 : vector<8x16xf32>
    %84 = arith.addf %45, %83 : vector<8x16xf32>
    %c0_33 = arith.constant 0 : index
    %c2_34 = arith.constant 2 : index
    %85 = memref.load %arg5[%c0_33, %c2_34] : memref<6x4xf32, #tpu.memory_space<smem>>
    %c1_35 = arith.constant 1 : index
    %c2_36 = arith.constant 2 : index
    %86 = memref.load %arg5[%c1_35, %c2_36] : memref<6x4xf32, #tpu.memory_space<smem>>
    %c2_37 = arith.constant 2 : index
    %c2_38 = arith.constant 2 : index
    %87 = memref.load %arg5[%c2_37, %c2_38] : memref<6x4xf32, #tpu.memory_space<smem>>
    %c3_39 = arith.constant 3 : index
    %c2_40 = arith.constant 2 : index
    %88 = memref.load %arg5[%c3_39, %c2_40] : memref<6x4xf32, #tpu.memory_space<smem>>
    %c4_41 = arith.constant 4 : index
    %c2_42 = arith.constant 2 : index
    %89 = memref.load %arg5[%c4_41, %c2_42] : memref<6x4xf32, #tpu.memory_space<smem>>
    %c5_43 = arith.constant 5 : index
    %c2_44 = arith.constant 2 : index
    %90 = memref.load %arg5[%c5_43, %c2_44] : memref<6x4xf32, #tpu.memory_space<smem>>
    %91 = vector.broadcast %85 : f32 to vector<8x16xf32>
    %92 = arith.mulf %91, %3 : vector<8x16xf32>
    %93 = vector.broadcast %86 : f32 to vector<8x16xf32>
    %94 = arith.addf %92, %93 : vector<8x16xf32>
    %95 = vector.broadcast %87 : f32 to vector<8x16xf32>
    %96 = arith.mulf %95, %3 : vector<8x16xf32>
    %97 = vector.broadcast %88 : f32 to vector<8x16xf32>
    %98 = arith.addf %96, %97 : vector<8x16xf32>
    %99 = vector.shape_cast %94 : vector<8x16xf32> to vector<8x1x16xf32>
    %100 = vector.shape_cast %5 : vector<8x16xf32> to vector<1x8x16xf32>
    %101 = vector.broadcast %99 : vector<8x1x16xf32> to vector<8x8x16xf32>
    %102 = vector.broadcast %100 : vector<1x8x16xf32> to vector<8x8x16xf32>
    %103 = arith.mulf %101, %102 : vector<8x8x16xf32>
    %104 = vector.shape_cast %98 : vector<8x16xf32> to vector<8x1x16xf32>
    %105 = vector.broadcast %104 : vector<8x1x16xf32> to vector<8x8x16xf32>
    %106 = arith.addf %103, %105 : vector<8x8x16xf32>
    %cst_45 = arith.constant dense<0xFF800000> : vector<8x16xf32>
    %107 = vector.multi_reduction <maximumf>, %106, %cst_45 [0] : vector<8x8x16xf32> to vector<8x16xf32>
    %108 = vector.shape_cast %107 : vector<8x16xf32> to vector<1x8x16xf32>
    %109 = vector.broadcast %108 : vector<1x8x16xf32> to vector<8x8x16xf32>
    %110 = arith.subf %106, %109 : vector<8x8x16xf32>
    %111 = math.exp %110 : vector<8x8x16xf32>
    %cst_46 = arith.constant dense<0.000000e+00> : vector<8x16xf32>
    %112 = vector.multi_reduction <add>, %111, %cst_46 [0] : vector<8x8x16xf32> to vector<8x16xf32>
    %113 = vector.broadcast %89 : f32 to vector<8x16xf32>
    %114 = arith.mulf %113, %1 : vector<8x16xf32>
    %115 = vector.broadcast %90 : f32 to vector<8x16xf32>
    %116 = arith.addf %114, %115 : vector<8x16xf32>
    %117 = vector.shape_cast %116 : vector<8x16xf32> to vector<8x1x16xf32>
    %118 = vector.broadcast %117 : vector<8x1x16xf32> to vector<8x8x16xf32>
    %119 = arith.mulf %111, %118 : vector<8x8x16xf32>
    %cst_47 = arith.constant dense<0.000000e+00> : vector<8x16xf32>
    %120 = vector.multi_reduction <add>, %119, %cst_47 [0] : vector<8x8x16xf32> to vector<8x16xf32>
    %121 = tpu.reciprocal %112 : vector<8x16xf32> -> vector<8x16xf32>
    %122 = arith.mulf %120, %121 : vector<8x16xf32>
    %123 = arith.addf %84, %122 : vector<8x16xf32>
    %c0_48 = arith.constant 0 : index
    %c3_49 = arith.constant 3 : index
    %124 = memref.load %arg5[%c0_48, %c3_49] : memref<6x4xf32, #tpu.memory_space<smem>>
    %c1_50 = arith.constant 1 : index
    %c3_51 = arith.constant 3 : index
    %125 = memref.load %arg5[%c1_50, %c3_51] : memref<6x4xf32, #tpu.memory_space<smem>>
    %c2_52 = arith.constant 2 : index
    %c3_53 = arith.constant 3 : index
    %126 = memref.load %arg5[%c2_52, %c3_53] : memref<6x4xf32, #tpu.memory_space<smem>>
    %c3_54 = arith.constant 3 : index
    %c3_55 = arith.constant 3 : index
    %127 = memref.load %arg5[%c3_54, %c3_55] : memref<6x4xf32, #tpu.memory_space<smem>>
    %c4_56 = arith.constant 4 : index
    %c3_57 = arith.constant 3 : index
    %128 = memref.load %arg5[%c4_56, %c3_57] : memref<6x4xf32, #tpu.memory_space<smem>>
    %c5_58 = arith.constant 5 : index
    %c3_59 = arith.constant 3 : index
    %129 = memref.load %arg5[%c5_58, %c3_59] : memref<6x4xf32, #tpu.memory_space<smem>>
    %130 = vector.broadcast %124 : f32 to vector<8x16xf32>
    %131 = arith.mulf %130, %3 : vector<8x16xf32>
    %132 = vector.broadcast %125 : f32 to vector<8x16xf32>
    %133 = arith.addf %131, %132 : vector<8x16xf32>
    %134 = vector.broadcast %126 : f32 to vector<8x16xf32>
    %135 = arith.mulf %134, %3 : vector<8x16xf32>
    %136 = vector.broadcast %127 : f32 to vector<8x16xf32>
    %137 = arith.addf %135, %136 : vector<8x16xf32>
    %138 = vector.shape_cast %133 : vector<8x16xf32> to vector<8x1x16xf32>
    %139 = vector.shape_cast %5 : vector<8x16xf32> to vector<1x8x16xf32>
    %140 = vector.broadcast %138 : vector<8x1x16xf32> to vector<8x8x16xf32>
    %141 = vector.broadcast %139 : vector<1x8x16xf32> to vector<8x8x16xf32>
    %142 = arith.mulf %140, %141 : vector<8x8x16xf32>
    %143 = vector.shape_cast %137 : vector<8x16xf32> to vector<8x1x16xf32>
    %144 = vector.broadcast %143 : vector<8x1x16xf32> to vector<8x8x16xf32>
    %145 = arith.addf %142, %144 : vector<8x8x16xf32>
    %cst_60 = arith.constant dense<0xFF800000> : vector<8x16xf32>
    %146 = vector.multi_reduction <maximumf>, %145, %cst_60 [0] : vector<8x8x16xf32> to vector<8x16xf32>
    %147 = vector.shape_cast %146 : vector<8x16xf32> to vector<1x8x16xf32>
    %148 = vector.broadcast %147 : vector<1x8x16xf32> to vector<8x8x16xf32>
    %149 = arith.subf %145, %148 : vector<8x8x16xf32>
    %150 = math.exp %149 : vector<8x8x16xf32>
    %cst_61 = arith.constant dense<0.000000e+00> : vector<8x16xf32>
    %151 = vector.multi_reduction <add>, %150, %cst_61 [0] : vector<8x8x16xf32> to vector<8x16xf32>
    %152 = vector.broadcast %128 : f32 to vector<8x16xf32>
    %153 = arith.mulf %152, %1 : vector<8x16xf32>
    %154 = vector.broadcast %129 : f32 to vector<8x16xf32>
    %155 = arith.addf %153, %154 : vector<8x16xf32>
    %156 = vector.shape_cast %155 : vector<8x16xf32> to vector<8x1x16xf32>
    %157 = vector.broadcast %156 : vector<8x1x16xf32> to vector<8x8x16xf32>
    %158 = arith.mulf %150, %157 : vector<8x8x16xf32>
    %cst_62 = arith.constant dense<0.000000e+00> : vector<8x16xf32>
    %159 = vector.multi_reduction <add>, %158, %cst_62 [0] : vector<8x8x16xf32> to vector<8x16xf32>
    %160 = tpu.reciprocal %151 : vector<8x16xf32> -> vector<8x16xf32>
    %161 = arith.mulf %159, %160 : vector<8x16xf32>
    %162 = arith.addf %123, %161 : vector<8x16xf32>
    %c0_63 = arith.constant 0 : index
    %163 = memref.load %arg6[%c0_63] : memref<1xf32, #tpu.memory_space<smem>>
    %164 = vector.broadcast %163 : f32 to vector<8x16xf32>
    %165 = arith.addf %162, %164 : vector<8x16xf32>
    %c0_64 = arith.constant 0 : index
    %c0_65 = arith.constant 0 : index
    %c0_66 = arith.constant 0 : index
    %166 = vector.load %arg7[%c0_64, %c0_65, %c0_66] : memref<1x8x16xf32, #tpu.memory_space<vmem>>, vector<1x8x16xf32>
    %167 = vector.shape_cast %166 : vector<1x8x16xf32> to vector<8x16xf32>
    %168 = vector.shape_cast %165 : vector<8x16xf32> to vector<1x8x16xf32>
    tpu.vector_store %arg7[%c0_64, %c0_65, %c0_66], %168 {strides = array<i32>} : memref<1x8x16xf32, #tpu.memory_space<vmem>>, vector<1x8x16xf32>,
    return
  }
  func.func @transform_0(%arg0: i32, %arg1: i32) -> (i32, i32, i32) {
    %c0_i32 = arith.constant 0 : i32
    %c0_i32_0 = arith.constant 0 : i32
    return %arg0, %c0_i32, %arg1 : i32, i32, i32
  }
  func.func @transform_1(%arg0: i32, %arg1: i32) -> (i32, i32, i32) {
    %c0_i32 = arith.constant 0 : i32
    %c0_i32_0 = arith.constant 0 : i32
    return %arg0, %c0_i32, %arg1 : i32, i32, i32
  }
  func.func @transform_2(%arg0: i32, %arg1: i32) -> (i32, i32, i32) {
    %c0_i32 = arith.constant 0 : i32
    %c0_i32_0 = arith.constant 0 : i32
    return %arg0, %c0_i32, %arg1 : i32, i32, i32
  }
  func.func @transform_3(%arg0: i32, %arg1: i32) -> (i32, i32) {
    %c0_i32 = arith.constant 0 : i32
    %c0_i32_0 = arith.constant 0 : i32
    %c0_i32_1 = arith.constant 0 : i32
    return %c0_i32, %c0_i32_0 : i32, i32
  }
  func.func @transform_4(%arg0: i32, %arg1: i32) -> i32 {
    %c0_i32 = arith.constant 0 : i32
    %c0_i32_0 = arith.constant 0 : i32
    return %c0_i32 : i32
  }
  func.func @transform_5(%arg0: i32, %arg1: i32) -> (i32, i32, i32) {
    %c0_i32 = arith.constant 0 : i32
    %c0_i32_0 = arith.constant 0 : i32
    return %arg0, %c0_i32, %arg1 : i32, i32, i32
  }
}

</mosaic_0001>

<bundles_post_ra>
// kernel: tpu_custom_call.1
= control target key start
LH: loop header
LB: loop body
LE: loop exit
PB: predicated region body
PF: predicated region fallthrough
CT: control target
= control target key end

     0   :  { %s3393_s0 = inlined_call_operand.hbm [shape: f32[2,8,16], index: 0, kind: input, shape index: {}]   ;;  %s3394_s1 = inlined_call_operand.vmem [shape: f32[2,8,16], index: 1, kind: input, shape index: {}]   ;;  %s3395_s2 = inlined_call_operand.hbm [shape: f32[2,8,16], index: 2, kind: input, shape index: {}]   ;;  %s3396_s3 = inlined_call_operand.vmem [shape: f32[6,4], index: 3, kind: input, shape index: {}]   ;;  %s3397_s4 = inlined_call_operand.<no memory space> [shape: f32[1], index: 4, kind: input, shape index: {}]   ;;  %s3398_s5 = inlined_call_operand.hbm [shape: f32[2,8,16], index: 5, kind: output, shape index: {}]  }
   0x1   :  { %3406 = sst [smem:[#allocation16_spill]] %s3393_s0 }
   0x2   :  { %3407 = sst [smem:[#allocation17_spill]] %s3396_s3 }
   0x3   :  { %10 = sst [smem:[#allocation2]] %s3397_s4 }
   0x4   :  { %11 = vsyncpa [#allocation4], 0 }
   0x5   :  { %13 = vsyncpa [#allocation4 + $0x1], 0 }
   0x6   :  { %14 = vsyncpa [#allocation8], 0 }
   0x7   :  { %16 = vsyncpa [#allocation8 + $0x1], 0 }
   0x8   :  { %17 = vsyncpa [#allocation6], 0 }
   0x9   :  { %18 = vsyncpa [#allocation5], 0 }
   0xa   :  { %20 = vsyncpa [#allocation5 + $0x1], 0  ;;  %s2429_s20 = smov 0   ;;  %s2431_s21 = smov 0  }
   0xb   :  { %s2433_s22 = smov 0   ;;  %s2435_s23 = smov 0  }
   0xc   :  { %s2437_s24 = smov 0   ;;  %s2439_s25 = smov 0  }
   0xd LB: > { %s2030_s4 = sadd.s32 4294967295, %s2389_s25   ;;  %s2031_s26 = sadd.s32 4294967294, %s2389_s25   ;;  %s2389_s25 = sphi %s2439_s25, %s26_s25   ;;  %s2385_s24 = sphi %s2437_s24, %s3431_s24   ;;  %s2381_s23 = sphi %s2435_s23, %s3430_s23   ;;  %s2377_s22 = sphi %s2433_s22, %s3429_s22   ;;  %s2373_s21 = sphi %s2431_s21, %s3428_s21   ;;  %s2369_s20 = sphi %s2429_s20, %s3427_s20  }
   0xe   : > { %p60_p0 = scmp.ne.s32.totalorder %s2373_s21, %s2369_s20  ;;  %p2463_p1 = scmp.eq.s32.totalorder %s2030_s4, 0 }
   0xf   : > { %p2467_p2 = scmp.eq.s32.totalorder %s2030_s4, 1  ;;  %p190_p3 = scmp.eq.s32.totalorder %s2031_s26, 1 }
  0x10   : > { %s3408_s27 = scalar_select %p2463_p1, 1, 0 }
  0x11   : > { %p2473_p4 = por %p2463_p1, %p60_p0  ;;  %p2032_p5 = scmp.ge.s32.totalorder %s2389_s25, 1 }
  0x12   : > { %p2478_p6 = por %p190_p3, %p60_p0  ;;  %p197_p7 = scmp.lt.s32.totalorder %s2389_s25, 3 }
  0x13   : > { %s3410_s29 = scalar_select %p2473_p4, 1, 0 }
  0x14   : > { %s3411_s30 = scalar_select %p2478_p6, 1, 0 }
  0x15   : > { %s3412_s3 = sld [smem:[#allocation17_spill]]  ;;  %p2486_p8 = pnand %p2032_p5, %p197_p7 }
  0x16   : > { %s38_s11 = sadd.s32 1, %s2385_s24  ;;  %s47_s12 = sadd.s32 1, %s2377_s22 }
  0x17   : > { %s3413_s9 = scalar_select %p2486_p8, 1, 0 }
  0x18   : > { %p2082_p10 = pneg %p2486_p8  ;;  %p40_p12 = scmp.ge.s32.totalorder %s38_s11, 2 }
  0x1a   : > { %p2495_p11 = pnand %p2082_p10, %p2463_p1 }
  0x1b   : > { %s210_s8 = sshll.u32 %s3412_s3, 4  ;;  %s211_s8 = int_to_ptr.vmem [resolvable:$true] %s210_s8 }
  0x1c   : > { %s2224_s13 = scalar_lea.vmem %s211_s8, 128  ;;  %p2226_p0 = pneg %p2495_p11 }
  0x1d   : > { %p2225_p13 = scmp.ne.s32.totalorder %s211_s8, %s2224_s13  ;;  %p2232_p7 = scmp.lt.s32.totalorder %s211_s8, %s211_s8 }
  0x1e   : > { %p2233_p6 = scmp.lt.s32.totalorder %s2224_s13, %s2224_s13 }
  0x1f   : > { %p2227_p3 = pnand %p2226_p0, %p2225_p13 }
  0x20   : > { %p2234_p9 = por %p2233_p6, %p2232_p7 }
  0x21   : > { %p2228_p5 = pneg %p2227_p3 }
  0x23   : > { %p2235_p4 = pnand %p2234_p9, %p2228_p5 }
  0x25   : > { %2238 = shalt.err (!%p2235_p4)
}
  0x26   : > { %s2391_s14 = smov [#allocation9]   ;;  %s3433_s11 = smov (%p40_p12, %s38_s11), 0 }
  0x27   : > { %2085 = dma.vmem_to_smem (!%p2495_p11), %s211_s8, 128, %s2391_s14, [#allocation6]  }
  0x28   : > { %3415 = sst [smem:[#allocation15_spill]] %s3433_s11  ;;  %p54_p10 = scmp.ne.s32.totalorder %s2377_s22, %s2373_s21 }
  0x29   : > { %p55_p6 = scmp.eq.s32.totalorder %s2389_s25, 0  ;;  %s42_s15 = ssub.s32 %s2385_s24, %s3433_s11 }
  0x2a   : > { %p2098_p4 = scmp.lt.s32.totalorder %s2389_s25, 2  ;;  %p45_p9 = scmp.eq.s32.totalorder %s42_s15, 0 }
  0x2b   : > { %p56_p13 = por %p55_p6, %p54_p10  ;;  %p2515_p0 = por %p2467_p2, %p54_p10 }
  0x2c   : > { %s2520_s17 = sand.u32 1, %s2377_s22   ;;  %s2036_s4 = sshll.u32 %s2385_s24, 7 }
  0x2d   : > { %s3416_s16 = scalar_select %p2515_p0, 1, 0 }
  0x2e   : > { %s2523_s18 = scalar_select %p45_p9, %s2377_s22, %s47_s12  }
  0x2f   : > { %s3400_s19 = sshll.u32 %s2520_s17, 3  ;;  %s3417_s0 = sld [smem:[#allocation16_spill]] }
  0x30   : > { %s228_s28 = scalar_lea.vmem [#allocation3], %s3400_s19  ;;  %p2536_p2 = pnand %p2098_p4, %p56_p13 }
  0x31   : > { %s236_s8 = sshll.u32 %s228_s28, 4  ;;  %s2543_s14 = scalar_lea.hbm %s3395_s2, %s2036_s4  ;;  %s2534_s8 = int_to_ptr.vmem [resolvable:$true] %s236_s8 }
  0x32   : > { %s225_s15 = scalar_lea.sflag [#allocation4], %s2520_s17  ;;  %p2241_p12 = pneg %p2536_p2 }
  0x35   : > { %s2530_s7 = scalar_lea.hbm %s3417_s0, %s2036_s4  ;;  %s2244_s19 = scalar_lea.hbm %s3417_s0, 256 }
  0x36   : > { %s2239_s26 = scalar_lea.hbm %s2530_s7, 128  ;;  %p2245_p7 = scmp.lt.u32.totalorder %s2530_s7, %s3417_s0 }
  0x37   : > { %p2240_p11 = scmp.ne.s32.totalorder %s2530_s7, %s2239_s26  ;;  %p2246_p10 = scmp.lt.u32.totalorder %s2244_s19, %s2239_s26 }
  0x38   : > { %p2248_p4 = scmp.lt.u32.totalorder %s2239_s26, %s2530_s7 }
  0x39   : > { %p2242_p3 = pnand %p2241_p12, %p2240_p11  ;;  %p2247_p6 = por %p2246_p10, %p2245_p7 }
  0x3b   : > { %p2243_p5 = pneg %p2242_p3  ;;  %p2249_p9 = por %p2248_p4, %p2247_p6 }
  0x3d   : > { %p2250_p13 = pnand %p2249_p9, %p2243_p5 }
  0x3f   : > { %2253 = shalt.err (!%p2250_p13)
}
  0x40   : > { %s2254_s4 = scalar_lea.vmem %s2534_s8, 128  ;;  %s2392_s12 = smov [#allocation3]  }
  0x41   : > { %p2255_p11 = scmp.ne.s32.totalorder %s2534_s8, %s2254_s4  ;;  %s2259_s13 = sshll.u32 %s2392_s12, 4  ;;  %s2260_s13 = int_to_ptr.vmem [resolvable:$false] %s2259_s13 }
  0x42   : > { %s2261_s3 = scalar_lea.vmem %s2260_s13, 256  ;;  %p2262_p1 = scmp.lt.s32.totalorder %s2534_s8, %s2260_s13 }
  0x43   : > { %p2257_p3 = pnand %p2255_p11, %p2241_p12  ;;  %p2263_p7 = scmp.lt.s32.totalorder %s2261_s3, %s2254_s4 }
  0x45   : > { %p2258_p0 = pneg %p2257_p3  ;;  %p2264_p10 = por %p2263_p7, %p2262_p1 }
  0x47   : > { %p2265_p6 = pnand %p2264_p10, %p2258_p0 }
  0x49   : > { %2268 = shalt.err (!%p2265_p6)
}
  0x4a   : > { %2089 = dma.hbm_to_vmem [thread:$0]  (!%p2536_p2), %s2530_s7, 128, %s2534_s8, %s225_s15  }
  0x4b   : > { %s3419_s11 = sshll.u32 %s2520_s17, 3  ;;  %s254_s6 = scalar_lea.sflag [#allocation8], %s2520_s17 }
  0x4c   : > { %s257_s19 = scalar_lea.vmem [#allocation7], %s3419_s11  ;;  %s2269_s28 = scalar_lea.hbm %s2543_s14, 128 }
  0x4d   : > { %s265_s26 = sshll.u32 %s257_s19, 4  ;;  %p2270_p1 = scmp.ne.s32.totalorder %s2543_s14, %s2269_s28  ;;  %s266_s26 = int_to_ptr.vmem [resolvable:$true] %s265_s26 }
  0x4e   : > { %s2274_s13 = scalar_lea.hbm %s3395_s2, 256  ;;  %p2275_p4 = scmp.lt.u32.totalorder %s2543_s14, %s3395_s2 }
  0x4f   : > { %p2272_p0 = pnand %p2270_p1, %p2241_p12  ;;  %p2276_p9 = scmp.lt.u32.totalorder %s2274_s13, %s2269_s28 }
  0x50   : > { %p2278_p11 = scmp.lt.u32.totalorder %s2269_s28, %s2543_s14 }
  0x51   : > { %p2273_p5 = pneg %p2272_p0  ;;  %p2277_p13 = por %p2276_p9, %p2275_p4 }
  0x53   : > { %p2279_p3 = por %p2278_p11, %p2277_p13 }
  0x55   : > { %p2280_p7 = pnand %p2279_p3, %p2273_p5 }
  0x57   : > { %2283 = shalt.err (!%p2280_p7)
}
  0x58   : > { %s2284_s17 = scalar_lea.vmem %s266_s26, 128  ;;  %s2393_s7 = smov [#allocation7]  }
  0x59   : > { %p2285_p10 = scmp.ne.s32.totalorder %s266_s26, %s2284_s17  ;;  %s2289_s8 = sshll.u32 %s2393_s7, 4  ;;  %s2290_s8 = int_to_ptr.vmem [resolvable:$false] %s2289_s8 }
  0x5a   : > { %s2291_s15 = scalar_lea.vmem %s2290_s8, 256  ;;  %p2292_p0 = scmp.lt.s32.totalorder %s266_s26, %s2290_s8 }
  0x5b   : > { %p2287_p6 = pnand %p2285_p10, %p2241_p12  ;;  %p2293_p8 = scmp.lt.s32.totalorder %s2291_s15, %s2284_s17 }
  0x5d   : > { %p2288_p1 = pneg %p2287_p6  ;;  %p2294_p4 = por %p2293_p8, %p2292_p0 }
  0x5f   : > { %p2295_p9 = pnand %p2294_p4, %p2288_p1 }
  0x61   : > { %2298 = shalt.err (!%p2295_p9)
}
  0x62   : > { %2092 = dma.hbm_to_vmem [thread:$0]  (!%p2536_p2), %s2543_s14, 128, %s266_s26, %s254_s6  }
  0x63   : > { %p3420_p5 = scmp.ne.s32.totalorder %s3413_s9, 0 }
  0x64   : > { %s2596_s0 = sand.u32 (!%p3420_p5), 1, %s2373_s21   ;;  %p3421_p8 = scmp.ne.s32.totalorder (!%p3420_p5), %s3410_s29, 0 }
  0x65   : > { %274 = sbr.rel (%p3420_p5) target bundleno = 327 (0x147), region = 40  ;;  %s2599_s11 = sshll.u32 (!%p3420_p5), %s2596_s0, 3 }
  0x66   : > { %s277_s19 = scalar_lea.sflag (!%p3420_p5), [#allocation4], %s2596_s0  ;;  %s280_s28 = scalar_lea.vmem (!%p3420_p5), [#allocation3], %s2599_s11 }
  0x6c   : > { %2352 = dma.done.wait (%p3421_p8), %s277_s19, 128  }
  0x6d   : > { %2354 = vsyncadd (%p3421_p8), %s277_s19, 4294967168  ;;  %s286_s9 = scalar_lea.sflag [#allocation8], %s2596_s0  ;;  %s289_s10 = scalar_lea.vmem [#allocation7], %s2599_s11 }
  0x6e   : > { %2356 = dma.done.wait (%p3421_p8), %s286_s9, 128  }
  0x6f   : > { %2358 = vsyncadd (%p3421_p8), %s286_s9, 4294967168  ;;  %p3422_p2 = scmp.ne.s32.totalorder %s3408_s27, 0 }
  0x71   : > { %2360 = dma.done.wait (%p3422_p2), [#allocation6], 128  }
  0x72   : > { %2362 = vsyncadd (%p3422_p2), [#allocation6], 4294967168 }
  0x73   : > { %298 = sfence }
  0x74   : > { %p333_p12 = scmp.lt.s32.totalorder %s2381_s23, 1  ;;  %v362_v0 = vlaneseq  ;;  %s343_s14 = sld [smem:[#allocation9]]  ;;  %v2394_v1 = vmov 1966171168   ;;  %v2645_v37 = vld [vmem:[%s289_s10] sm:$0xff]  ;;  %vm553_vm0 = vcmask 130048  }
  0x75   : > { %s2045_s26 = sld [smem:[#allocation9 + $0x80]]  ;;  %v360_v2 = vunpack.c.l.s4 %v2394_v1  ;;  %s2632_s17 = sld [smem:[#allocation9 + $0x1]] }
  0x76   : > { %s334_s6 = scalar_select %p333_p12, %s2381_s23, 1  ;;  %v363_v4 = vshrl.u32 %v362_v0, 7 }
  0x77   : > { %s2046_s4 = sld [smem:[#allocation9 + $0x100]]  ;;  %v361_v3 = vunpack.c.0.s8 %v360_v2  ;;  %s2656_s8 = sld [smem:[#allocation9 + $0x81]] }
  0x78   : > { %s2047_s12 = sld [smem:[#allocation9 + $0x180]]  ;;  %s2044_s29 = sshll.u32 %s334_s6, 3  ;;  %v2636_v25 = vsub.s32 0, %v363_v4 }
  0x79   : > { %s339_s27 = scalar_lea.vmem %s3394_s1, %s2044_s29  ;;  %v2625_v9 = vsub.s32 %v361_v3, %v363_v4  ;;  %s2650_s7 = sld [smem:[#allocation9 + $0x200]] }
  0x7a   : > { %v2622_v5 = vld [vmem:[%s339_s27] sm:$0xff]  ;;  %v349_v6 = vstv %s343_s14  ;;  %s2665_s15 = sld [smem:[#allocation9 + $0x280]]  ;;  %s2671_s19 = sld [smem:[#allocation9 + $0x101]] }
  0x7b   : > { %v351_v7 = vstv %s2045_s26  ;;  %v350_v8 = vmul.f32 %v349_v6, %v2622_v5  ;;  %v734_v47 = vstv %s2632_s17  ;;  %s2053_s9 = sld [smem:[#allocation9 + $0x181]]  ;;  %s2825_s26 = sld [smem:[#allocation9 + $0x82]] }
  0x7c   : > { %v735_v6 = vmul.f32 %v734_v47, %v2622_v5  ;;  %s2808_s14 = sld [smem:[#allocation9 + $0x201]]  ;;  %s2878_s29 = sld [smem:[#allocation9 + $0x202]] }
  0x7d   : > { %v353_v10 = vstv %s2046_s4  ;;  %v352_v12 = vadd.f32 %v351_v7, %v350_v8  ;;  %v736_v7 = vstv %s2656_s8  ;;  %v2686_v8 = vld [vmem:[%s280_s28] sm:$0xff]  ;;  %s2794_s28 = sld [smem:[#allocation9 + $0x2]]  ;;  %s2827_s6 = sld [smem:[#allocation9 + $0x281]] }
  0x7e   : > { %v355_v11 = vstv %s2047_s12  ;;  %v354_v13 = vmul.f32 %v353_v10, %v2622_v5  ;;  %s2867_s4 = sld [smem:[#allocation9 + $0x102]]  ;;  %s2885_s13 = sld [smem:[#allocation9 + $0x3]] }
  0x7f   : > { %v358_v15 = vcombine.high %v352_v12, %v352_v12  ;;  %v365_v16 = vrot.slane %v352_v12, %v2625_v9  ;;  %v608_v4 = vstv %s2650_s7  ;;  %s2876_s12 = sld [smem:[#allocation9 + $0x182]]  ;;  %s2992_s3 = sld [smem:[#allocation9 + $0x83]] }
  0x80   : > { %v356_v14 = vadd.f32 %v355_v11, %v354_v13  ;;  %s3004_s27 = sld [smem:[#allocation9 + $0x282]]  ;;  %s3041_s17 = sld [smem:[#allocation9 + $0x103]] }
  0x81   : > { %v372_v17 = vrot.slane %v358_v15, %v2625_v9  ;;  %v373_v18 = vcombine.high %v365_v16, %v365_v16  ;;  %v381_v19 = vrot.slane %v365_v16, %v2625_v9  ;;  %s3065_s7 = sld [smem:[#allocation9 + $0x183]]  ;;  %p3423_p11 = scmp.ne.s32.totalorder %s3416_s16, 0 }
  0x82   : > { %v456_v20 = vcombine.high %v356_v14, %v356_v14  ;;  %v463_v21 = vrot.slane %v356_v14, %v2625_v9  ;;  %s3141_s8 = sld [smem:[#allocation9 + $0x203]] }
  0x83   : > { %v374_v22 = vcombine.high %v372_v17, %v372_v17  ;;  %v388_v23 = vrot.slane %v372_v17, %v2625_v9  ;;  %v395_v24 = vrot.slane %v373_v18, %v2625_v9  ;;  %v403_v26 = vcombine.high %v381_v19, %v381_v19 }
  0x84   : > { %v470_v27 = vrot.slane %v456_v20, %v2625_v9  ;;  %v471_v31 = vcombine.high %v463_v21, %v463_v21  ;;  %v410_v34 = vrot.slane %v381_v19, %v2636_v25  ;;  %v479_v36 = vrot.slane %v463_v21, %v2625_v9 }
  0x85   : > { %v402_v28 = vrot.slane %v374_v22, %v2625_v9  ;;  %v404_v29 = vcombine.high %v388_v23, %v388_v23  ;;  %v405_v30 = vcombine.high %v395_v24, %v395_v24  ;;  %v414_v35 = vrot.slane %v395_v24, %v2636_v25 }
  0x86   : > { %v472_v32 = vcombine.high %v470_v27, %v470_v27  ;;  %v418_v38 = vrot.slane %v403_v26, %v2636_v25  ;;  %v426_v39 = vrot.slane %v388_v23, %v2636_v25  ;;  %v486_v40 = vrot.slane %v470_v27, %v2625_v9 }
  0x87   : > { %v406_v33 = vcombine.high %v402_v28, %v402_v28  ;;  %v422_v41 = vrot.slane %v405_v30, %v2636_v25  ;;  %v430_v42 = vrot.slane %v402_v28, %v2636_v25  ;;  %v434_v43 = vrot.slane %v404_v29, %v2636_v25 }
  0x88   : > { %v493_v45 = vrot.slane %v471_v31, %v2625_v9  ;;  %v500_v46 = vrot.slane %v472_v32, %v2625_v9  ;;  %v447_v48 = vmul.f32 %v410_v34, %v2645_v37  ;;  %v448_v49 = vmul.f32 %v414_v35, %v2645_v37 }
  0x89   : > { %v438_v44 = vrot.slane %v406_v33, %v2636_v25  ;;  %v501_v50 = vcombine.high %v479_v36, %v479_v36  ;;  %v502_v51 = vcombine.high %v486_v40, %v486_v40  ;;  %v449_v52 = vmul.f32 %v418_v38, %v2645_v37 }
  0x8a   : > { %v451_v53 = vmul.f32 %v426_v39, %v2645_v37  ;;  %v503_v54 = vcombine.high %v493_v45, %v493_v45  ;;  %v504_v55 = vcombine.high %v500_v46, %v500_v46  ;;  %v450_v56 = vmul.f32 %v422_v41, %v2645_v37 }
  0x8b   : > { %v452_v57 = vmul.f32 %v430_v42, %v2645_v37  ;;  %v453_v58 = vmul.f32 %v434_v43, %v2645_v37  ;;  %v454_v59 = vmul.f32 %v438_v44, %v2645_v37  ;;  %v508_v60 = vrot.slane %v479_v36, %v2636_v25 }
  0x8c   : > { %v512_v61 = vrot.slane %v493_v45, %v2636_v25  ;;  %v524_v62 = vrot.slane %v486_v40, %v2636_v25  ;;  %v528_v63 = vrot.slane %v500_v46, %v2636_v25  ;;  %v516_v0 = vrot.slane %v501_v50, %v2636_v25 }
  0x8d   : > { %v520_v1 = vrot.slane %v503_v54, %v2636_v25  ;;  %v532_v2 = vrot.slane %v502_v51, %v2636_v25  ;;  %v536_v3 = vrot.slane %v504_v55, %v2636_v25  ;;  %v2688_v10 = vadd.f32 %v508_v60, %v447_v48 }
  0x8e   : > { %v2690_v11 = vadd.f32 %v512_v61, %v448_v49  ;;  %v2692_v12 = vadd.f32 %v524_v62, %v451_v53  ;;  %v2694_v13 = vadd.f32 %v528_v63, %v452_v57  ;;  %v2696_v14 = vadd.f32 %v516_v0, %v449_v52 }
  0x8f   : > { %v2698_v15 = vadd.f32 %v520_v1, %v450_v56  ;;  %v2700_v16 = vadd.f32 %v532_v2, %v453_v58  ;;  %v2702_v17 = vadd.f32 %v536_v3, %v454_v59  ;;  %v609_v18 = vmul.f32 %v608_v4, %v2686_v8 }
  0x90   : > { %v610_v19 = vstv %s2665_s15  ;;  %v737_v20 = vadd.f32 %v736_v7, %v735_v6  ;;  %v738_v21 = vstv %s2671_s19  ;;  %v554_v22 = vsel %vm553_vm0, %v2688_v10, -inf  ;;  %s3193_s15 = sld [smem:[#allocation9 + $0x283]]  ;;  %s2069_s19 = sshll.u32 %s2381_s23, 7 }
  0x91   : > { %v555_v23 = vsel %vm553_vm0, %v2690_v11, -inf  ;;  %v558_v24 = vsel %vm553_vm0, %v2692_v12, -inf  ;;  %v560_v26 = vsel %vm553_vm0, %v2694_v13, -inf  ;;  %v556_v27 = vsel %vm553_vm0, %v2696_v14, -inf  ;;  %s2395_s23 = smov [#allocation10]  }
  0x92   : > { %v557_v28 = vsel %vm553_vm0, %v2698_v15, -inf  ;;  %v562_v29 = vsel %vm553_vm0, %v2700_v16, -inf  ;;  %v564_v30 = vsel %vm553_vm0, %v2702_v17, -inf  ;;  %v559_v31 = vmax.f32 %v554_v22, %v558_v24 }
  0x93   : > { %v561_v32 = vmax.f32 %v555_v23, %v560_v26  ;;  %v611_v33 = vadd.f32 %v610_v19, %v609_v18  ;;  %v563_v34 = vmax.f32 %v556_v27, %v562_v29  ;;  %v565_v35 = vmax.f32 %v557_v28, %v564_v30 }
  0x94   : > { %v739_v36 = vmul.f32 %v738_v21, %v2622_v5  ;;  %v743_v38 = vcombine.high %v737_v20, %v737_v20  ;;  %v740_v39 = vstv %s2053_s9  ;;  %v750_v42 = vrot.slane %v737_v20, %v2625_v9  ;;  %s332_s9 = scalar_lea.vmem [#allocation10], %s2599_s11  ;;  %s2303_s11 = sshll.u32 %s2395_s23, 4  ;;  %s2304_s11 = int_to_ptr.vmem [resolvable:$false] %s2303_s11 }
  0x95   : > { %v613_v40 = vcombine.high %v611_v33, %v611_v33  ;;  %v620_v41 = vrot.slane %v611_v33, %v2625_v9  ;;  %v566_v43 = vmax.f32 %v559_v31, %v561_v32  ;;  %v567_v44 = vmax.f32 %v563_v34, %v565_v35 }
  0x96   : > { %v741_v45 = vadd.f32 %v740_v39, %v739_v36  ;;  %v757_v46 = vrot.slane %v743_v38, %v2625_v9  ;;  %v758_v49 = vcombine.high %v750_v42, %v750_v42  ;;  %v766_v54 = vrot.slane %v750_v42, %v2625_v9 }
  0x97   : > { %v2728_v47 = vrot.slane %v613_v40, %v2625_v9  ;;  %v628_v48 = vcombine.high %v620_v41, %v620_v41  ;;  %v2730_v50 = vmax.f32 %v566_v43, %v567_v44  ;;  %v2733_v53 = vrot.slane %v620_v41, %v2625_v9 }
  0x98   : > { %v759_v51 = vcombine.high %v757_v46, %v757_v46  ;;  %v841_v52 = vcombine.high %v741_v45, %v741_v45  ;;  %v780_v57 = vrot.slane %v758_v49, %v2625_v9  ;;  %v848_v58 = vrot.slane %v741_v45, %v2625_v9 }
  0x99   : > { %v629_v55 = vcombine.high %v2728_v47, %v2728_v47  ;;  %v2739_v56 = vrot.slane %v628_v48, %v2625_v9  ;;  %v569_v59 = vsub.f32 %v2688_v10, %v2730_v50  ;;  %v773_v60 = vrot.slane %v757_v46, %v2625_v9 }
  0x9a   : > { %v787_v61 = vrot.slane %v759_v51, %v2625_v9  ;;  %v855_v62 = vrot.slane %v841_v52, %v2625_v9  ;;  %v570_v63 = vsub.f32 %v2690_v11, %v2730_v50  ;;  %v571_v0 = vsub.f32 %v2696_v14, %v2730_v50 }
  0x9b   : > { %v572_v1 = vsub.f32 %v2698_v15, %v2730_v50  ;;  %v658_v2 = vcombine.high %v2733_v53, %v2733_v53  ;;  %v573_v3 = vsub.f32 %v2692_v12, %v2730_v50  ;;  %v574_v4 = vsub.f32 %v2694_v13, %v2730_v50 }
  0x9c   : > { %v575_v6 = vsub.f32 %v2700_v16, %v2730_v50  ;;  %v788_v7 = vcombine.high %v766_v54, %v766_v54  ;;  %v576_v10 = vsub.f32 %v2702_v17, %v2730_v50  ;;  %v790_v11 = vcombine.high %v780_v57, %v780_v57 }
  0x9d   : > { %v856_v14 = vcombine.high %v848_v58, %v848_v58  ;;  %v857_v18 = vcombine.high %v855_v62, %v855_v62  ;;  %v577_v15 = vmul.f32 1.442695, %v569_v59  ;;  %v789_v19 = vcombine.high %v773_v60, %v773_v60 }
  0x9e   : > { %v791_v20 = vcombine.high %v787_v61, %v787_v61  ;;  %v864_v21 = vrot.slane %v848_v58, %v2625_v9  ;;  %v579_v22 = vmul.f32 1.442695, %v570_v63  ;;  %v581_v12 = vmul.f32 1.442695, %v571_v0 }
  0x9f   : > { %v795_v23 = vrot.slane %v766_v54, %v2636_v25  ;;  %v799_v13 = vrot.slane %v780_v57, %v2636_v25  ;;  %v803_v16 = vrot.slane %v788_v7, %v2636_v25  ;;  %v811_v24 = vrot.slane %v773_v60, %v2636_v25 }
  0xa0   : > { %v815_v26 = vrot.slane %v787_v61, %v2636_v25  ;;  %v871_v27 = vrot.slane %v855_v62, %v2625_v9  ;;  %v583_v28 = vmul.f32 1.442695, %v572_v1  ;;  %v807_v29 = vrot.slane %v790_v11, %v2636_v25 }
  0xa1   : > { %v878_v30 = vrot.slane %v856_v14, %v2625_v9  ;;  %v885_v31 = vrot.slane %v857_v18, %v2625_v9  ;;  %2151 = vpow2.f32 %v577_v15  ;;  %v819_v32 = vrot.slane %v789_v19, %v2636_v25 }
  0xa2   : > { %v823_v33 = vrot.slane %v791_v20, %v2636_v25  ;;  %v886_v34 = vcombine.high %v864_v21, %v864_v21  ;;  %2153 = vpow2.f32 %v579_v22  ;;  %v585_v35 = vmul.f32 1.442695, %v573_v3 }
  0xa3   : > { %v832_v36 = vmul.f32 %v795_v23, %v2645_v37  ;;  %v833_v38 = vmul.f32 %v799_v13, %v2645_v37  ;;  %v834_v39 = vmul.f32 %v803_v16, %v2645_v37  ;;  %v836_v40 = vmul.f32 %v811_v24, %v2645_v37 }
  0xa4   : > { %v837_v41 = vmul.f32 %v815_v26, %v2645_v37  ;;  %v887_v42 = vcombine.high %v871_v27, %v871_v27  ;;  %v835_v43 = vmul.f32 %v807_v29, %v2645_v37  ;;  %v888_v44 = vcombine.high %v878_v30, %v878_v30 }
  0xa5   : > { %v889_v45 = vcombine.high %v885_v31, %v885_v31  ;;  %v893_v46 = vrot.slane %v864_v21, %v2636_v25  ;;  %v838_v48 = vmul.f32 %v819_v32, %v2645_v37  ;;  %v839_v49 = vmul.f32 %v823_v33, %v2645_v37 }
  0xa6   : > { %v897_v51 = vrot.slane %v878_v30, %v2636_v25  ;;  %v901_v52 = vrot.slane %v886_v34, %v2636_v25  ;;  %v905_v54 = vrot.slane %v888_v44, %v2636_v25  ;;  %v909_v57 = vrot.slane %v871_v27, %v2636_v25 }
  0xa7   : > { %v913_v58 = vrot.slane %v885_v31, %v2636_v25  ;;  %v917_v59 = vrot.slane %v887_v42, %v2636_v25  ;;  %2155 = vpow2.f32 %v581_v12  ;;  %v587_v60 = vmul.f32 1.442695, %v574_v4 }
  0xa8   : > { %v921_v61 = vrot.slane %v889_v45, %v2636_v25  ;;  %v2792_v62 = vadd.f32 %v893_v46, %v832_v36  ;;  %v2796_v63 = vadd.f32 %v897_v51, %v833_v38  ;;  %v2798_v0 = vadd.f32 %v901_v52, %v834_v39 }
  0xa9   : > { %v2800_v1 = vadd.f32 %v905_v54, %v835_v43  ;;  %v2802_v3 = vadd.f32 %v909_v57, %v836_v40  ;;  %2157 = vpow2.f32 %v583_v28  ;;  %v589_v7 = vmul.f32 1.442695, %v575_v6 }
  0xaa   : > { %v2804_v11 = vadd.f32 %v913_v58, %v837_v41  ;;  %v2806_v14 = vadd.f32 %v917_v59, %v838_v48  ;;  %v2810_v4 = vadd.f32 %v921_v61, %v839_v49  ;;  %v938_v18 = vsel %vm553_vm0, %v2792_v62, -inf }
  0xab   : > { %v939_v15 = vsel %vm553_vm0, %v2796_v63, -inf  ;;  %v940_v19 = vsel %vm553_vm0, %v2798_v0, -inf  ;;  %v2152_v20 = vpop.eup %2151  ;;  %2159 = vpow2.f32 %v585_v35  ;;  %v591_v6 = vmul.f32 1.442695, %v576_v10 }
  0xac   : > { %v941_v21 = vsel %vm553_vm0, %v2800_v1, -inf  ;;  %v942_v22 = vsel %vm553_vm0, %v2802_v3, -inf  ;;  %v2154_v12 = vpop.eup %2153  ;;  %v944_v13 = vsel %vm553_vm0, %v2804_v11, -inf  ;;  %v946_v17 = vsel %vm553_vm0, %v2806_v14, -inf }
  0xad   : > { %v943_v23 = vmax.f32 %v938_v18, %v942_v22  ;;  %v948_v50 = vsel %vm553_vm0, %v2810_v4, -inf  ;;  %v665_v10 = vrot.slane %v2733_v53, %v2636_v25  ;;  %v945_v16 = vmax.f32 %v939_v15, %v944_v13 }
  0xae   : > { %v947_v24 = vmax.f32 %v940_v19, %v946_v17  ;;  %v949_v26 = vmax.f32 %v941_v21, %v948_v50  ;;  %2161 = vpow2.f32 %v587_v60  ;;  %v643_v27 = vrot.slane %v2728_v47, %v2625_v9 }
  0xaf   : > { %v660_v28 = vcombine.high %v2739_v56, %v2739_v56  ;;  %v669_v29 = vrot.slane %v2739_v56, %v2636_v25  ;;  %2163 = vpow2.f32 %v589_v7  ;;  %v950_v30 = vmax.f32 %v943_v23, %v945_v16 }
  0xb0   : > { %v951_v31 = vmax.f32 %v947_v24, %v949_v26  ;;  %v1118_v32 = vstv %s2794_s28  ;;  %2165 = vpow2.f32 %v591_v6  ;;  %v593_v33 = vsel %vm553_vm0, %v2152_v20, 0.0  ;;  %s1899_s28 = sshll.u32 %s332_s9, 4  ;;  %s3345_s28 = int_to_ptr.vmem [resolvable:$true] %s1899_s28 }
  0xb1   : > { %v594_v34 = vsel %vm553_vm0, %v2154_v12, 0.0  ;;  %v657_v35 = vrot.slane %v629_v55, %v2625_v9  ;;  %v2156_v36 = vpop.eup %2155  ;;  %v659_v38 = vcombine.high %v643_v27, %v643_v27  ;;  %v673_v56 = vrot.slane %v658_v2, %v2636_v25  ;;  %p2306_p10 = scmp.lt.s32.totalorder %s3345_s28, %s2304_s11 }
  0xb2   : > { %v702_v39 = vmul.f32 %v2152_v20, %v665_v10  ;;  %v2854_v40 = vmax.f32 %v950_v30, %v951_v31  ;;  %v677_v41 = vrot.slane %v660_v28, %v2636_v25  ;;  %v703_v42 = vmul.f32 %v2154_v12, %v669_v29 }
  0xb3   : > { %v992_v43 = vstv %s2808_s14  ;;  %v1119_v44 = vmul.f32 %v1118_v32, %v2622_v5  ;;  %v2158_v45 = vpop.eup %2157  ;;  %v595_v47 = vadd.f32 %v594_v34, %v593_v33  ;;  %v1120_v53 = vstv %s2825_s26 }
  0xb4   : > { %v953_v55 = vsub.f32 %v2792_v62, %v2854_v40  ;;  %v954_v46 = vsub.f32 %v2796_v63, %v2854_v40  ;;  %v596_v2 = vsel %vm553_vm0, %v2156_v36, 0.0  ;;  %v661_v48 = vcombine.high %v657_v35, %v657_v35 }
  0xb5   : > { %v681_v49 = vrot.slane %v643_v27, %v2636_v25  ;;  %v994_v51 = vstv %s2827_s6  ;;  %v2160_v52 = vpop.eup %2159  ;;  %v704_v54 = vmul.f32 %v2156_v36, %v673_v56  ;;  %v710_v57 = vsel %vm553_vm0, %v702_v39, 0.0  ;;  %s3343_s6 = scalar_lea.hbm %s3398_s5, %s2069_s19 }
  0xb6   : > { %v961_v58 = vmul.f32 1.442695, %v953_v55  ;;  %v993_v59 = vmul.f32 %v992_v43, %v2686_v8  ;;  %v711_v60 = vsel %vm553_vm0, %v703_v42, 0.0  ;;  %v955_v61 = vsub.f32 %v2798_v0, %v2854_v40 }
  0xb7   : > { %v963_v62 = vmul.f32 1.442695, %v954_v46  ;;  %v1121_v63 = vadd.f32 %v1120_v53, %v1119_v44  ;;  %v597_v7 = vadd.f32 %v596_v2, %v595_v47  ;;  %v685_v18 = vrot.slane %v657_v35, %v2636_v25 }
  0xb8   : > { %v689_v15 = vrot.slane %v659_v38, %v2636_v25  ;;  %v705_v19 = vmul.f32 %v2158_v45, %v677_v41  ;;  %v2162_v20 = vpop.eup %2161  ;;  %v598_v6 = vsel %vm553_vm0, %v2158_v45, 0.0  ;;  %v600_v21 = vsel %vm553_vm0, %v2160_v52, 0.0 }
  0xb9   : > { %v693_v22 = vrot.slane %v661_v48, %v2636_v25  ;;  %v956_v0 = vsub.f32 %v2800_v1, %v2854_v40  ;;  %v2164_v12 = vpop.eup %2163  ;;  %v706_v23 = vmul.f32 %v2160_v52, %v681_v49  ;;  %v712_v13 = vadd.f32 %v711_v60, %v710_v57 }
  0xba   : > { %2167 = vpow2.f32 %v961_v58  ;;  %v995_v17 = vadd.f32 %v994_v51, %v993_v59  ;;  %v2166_v50 = vpop.eup %2165  ;;  %v713_v10 = vsel %vm553_vm0, %v704_v54, 0.0  ;;  %v965_v16 = vmul.f32 1.442695, %v955_v61 }
  0xbb   : > { %2169 = vpow2.f32 %v963_v62  ;;  %v1127_v24 = vcombine.high %v1121_v63, %v1121_v63  ;;  %v599_v26 = vadd.f32 %v598_v6, %v597_v7  ;;  %v602_v27 = vsel %vm553_vm0, %v2162_v20, 0.0 }
  0xbc   : > { %v707_v28 = vmul.f32 %v2162_v20, %v685_v18  ;;  %v715_v1 = vsel %vm553_vm0, %v705_v19, 0.0  ;;  %v2891_v29 = vsel %vm553_vm0, %v2164_v12, 0.0  ;;  %v967_v30 = vmul.f32 1.442695, %v956_v0 }
  0xbd   : > { %v1122_v31 = vstv %s2867_s4  ;;  %v1134_v32 = vrot.slane %v1121_v63, %v2625_v9  ;;  %v2896_v33 = vsel %vm553_vm0, %v2166_v50, 0.0  ;;  %v2898_v34 = vmul.f32 %v2164_v12, %v689_v15  ;;  %s1885_s4 = scalar_lea.sflag [#allocation5], %s2596_s0 }
  0xbe   : > { %v714_v35 = vadd.f32 %v713_v10, %v712_v13  ;;  %v1004_v36 = vrot.slane %v995_v17, %v2625_v9  ;;  %v2901_v38 = vmul.f32 %v2166_v50, %v693_v22  ;;  %v2904_v56 = vsel %vm553_vm0, %v706_v23, 0.0 }
  0xbf   : > { %2171 = vpow2.f32 %v965_v16  ;;  %v1141_v39 = vrot.slane %v1127_v24, %v2625_v9  ;;  %v601_v41 = vadd.f32 %v600_v21, %v599_v26  ;;  %v1123_v42 = vmul.f32 %v1122_v31, %v2622_v5 }
  0xc0   : > { %v1124_v43 = vstv %s2876_s12  ;;  %v1376_v44 = vstv %s2878_s29  ;;  %v957_v45 = vsub.f32 %v2802_v3, %v2854_v40  ;;  %2173 = vpow2.f32 %v967_v30  ;;  %s2299_s12 = scalar_lea.vmem %s3345_s28, 128  ;;  %s2305_s29 = scalar_lea.vmem %s2304_s11, 256 }
  0xc1   : > { %v1142_v47 = vcombine.high %v1134_v32, %v1134_v32  ;;  %v1502_v55 = vstv %s2885_s13  ;;  %v958_v46 = vsub.f32 %v2804_v11, %v2854_v40  ;;  %v997_v53 = vcombine.high %v995_v17, %v995_v17  ;;  %p2300_p13 = scmp.ne.s32.totalorder %s3345_s28, %s2299_s12  ;;  %p2307_p6 = scmp.lt.s32.totalorder %s2305_s29, %s2299_s12 }
  0xc2   : > { %v1012_v2 = vcombine.high %v1004_v36, %v1004_v36  ;;  %v1020_v48 = vrot.slane %v1004_v36, %v2625_v9  ;;  %v2917_v49 = vsel %vm553_vm0, %v707_v28, 0.0  ;;  %v959_v51 = vsub.f32 %v2806_v14, %v2854_v40 }
  0xc3   : > { %v960_v52 = vsub.f32 %v2810_v4, %v2854_v40  ;;  %v1143_v3 = vcombine.high %v1141_v39, %v1141_v39  ;;  %v2923_v57 = vadd.f32 %v602_v27, %v601_v41  ;;  %v2925_v58 = vadd.f32 %v715_v1, %v714_v35  ;;  %p2301_p3 = pnand %p2300_p13, %p3423_p11  ;;  %p2308_p1 = por %p2307_p6, %p2306_p10 }
  0xc4   : > { %v2168_v54 = vpop.eup %2167  ;;  %v1125_v11 = vadd.f32 %v1124_v43, %v1123_v42  ;;  %v1150_v59 = vrot.slane %v1134_v32, %v2625_v9  ;;  %v969_v61 = vmul.f32 1.442695, %v957_v45  ;;  %v1164_v62 = vrot.slane %v1142_v47, %v2625_v9 }
  0xc5   : > { %v2170_v60 = vpop.eup %2169  ;;  %v2930_v63 = vmul.f32 %v1376_v44, %v2686_v8  ;;  %v2933_v14 = vmul.f32 %v1502_v55, %v2622_v5  ;;  %v971_v4 = vmul.f32 1.442695, %v958_v46  ;;  %v2936_v40 = vrot.slane %v997_v53, %v2625_v9  ;;  %p2302_p7 = pneg %p2301_p3 }
  0xc6   : > { %v2939_v7 = vrot.slane %v1012_v2, %v2625_v9  ;;  %v1042_v18 = vcombine.high %v1020_v48, %v1020_v48  ;;  %v973_v15 = vmul.f32 1.442695, %v959_v51  ;;  %v2941_v19 = vmul.f32 1.442695, %v960_v52 }
  0xc7   : > { %v1157_v20 = vrot.slane %v1141_v39, %v2625_v9  ;;  %v1171_v6 = vrot.slane %v1143_v3, %v2625_v9  ;;  %v977_v21 = vsel %vm553_vm0, %v2168_v54, 0.0  ;;  %v978_v22 = vsel %vm553_vm0, %v2170_v60, 0.0  ;;  %p2309_p0 = pnand %p2308_p1, %p2302_p7 }
  0xc8   : > { %v1172_v0 = vcombine.high %v1150_v59, %v1150_v59  ;;  %v1225_v12 = vcombine.high %v1125_v11, %v1125_v11  ;;  %2175 = vpow2.f32 %v969_v61  ;;  %v1044_v13 = vcombine.high %v2939_v7, %v2939_v7 }
  0xc9   : > { %v2947_v23 = vpop.eup %2171  ;;  %v1174_v17 = vcombine.high %v1164_v62, %v1164_v62  ;;  %v1232_v50 = vrot.slane %v1125_v11, %v2625_v9  ;;  %2177 = vpow2.f32 %v971_v4  ;;  %v1049_v10 = vrot.slane %v1020_v48, %v2636_v25 }
  0xca   : > { %v1053_v16 = vrot.slane %v2939_v7, %v2636_v25  ;;  %v2956_v24 = vrot.slane %v1042_v18, %v2636_v25  ;;  %v2958_v26 = vpop.eup %2173  ;;  %v979_v27 = vadd.f32 %v978_v22, %v977_v21  ;;  %v1173_v28 = vcombine.high %v1157_v20, %v1157_v20 }
  0xcb   : > { %v1175_v1 = vcombine.high %v1171_v6, %v1171_v6  ;;  %v1179_v30 = vrot.slane %v1150_v59, %v2636_v25  ;;  %v980_v31 = vsel %vm553_vm0, %v2947_v23, 0.0  ;;  %v1183_v32 = vrot.slane %v1164_v62, %v2636_v25 }
  0xcc   : > { %v1187_v35 = vrot.slane %v1172_v0, %v2636_v25  ;;  %v1239_v36 = vrot.slane %v1225_v12, %v2625_v9  ;;  %2179 = vpow2.f32 %v973_v15  ;;  %v1191_v39 = vrot.slane %v1174_v17, %v2636_v25 }
  0xcd   : > { %v1195_v41 = vrot.slane %v1157_v20, %v2636_v25  ;;  %v1240_v42 = vcombine.high %v1232_v50, %v1232_v50  ;;  %v982_v43 = vsel %vm553_vm0, %v2958_v26, 0.0  ;;  %v2970_v44 = vmul.f32 %v2168_v54, %v1049_v10 }
  0xce   : > { %v2972_v45 = vmul.f32 %v2170_v60, %v1053_v16  ;;  %v1199_v47 = vrot.slane %v1171_v6, %v2636_v25  ;;  %v981_v55 = vadd.f32 %v980_v31, %v979_v27  ;;  %v1203_v46 = vrot.slane %v1173_v28, %v2636_v25 }
  0xcf   : > { %v1207_v53 = vrot.slane %v1175_v1, %v2636_v25  ;;  %v1216_v2 = vmul.f32 %v1179_v30, %v2645_v37  ;;  %v1217_v48 = vmul.f32 %v1183_v32, %v2645_v37  ;;  %v1218_v51 = vmul.f32 %v1187_v35, %v2645_v37 }
  0xd0   : > { %v1241_v52 = vcombine.high %v1239_v36, %v1239_v36  ;;  %v1248_v3 = vrot.slane %v1232_v50, %v2625_v9  ;;  %v1219_v54 = vmul.f32 %v1191_v39, %v2645_v37  ;;  %v1220_v11 = vmul.f32 %v1195_v41, %v2645_v37 }
  0xd1   : > { %v1255_v59 = vrot.slane %v1239_v36, %v2625_v9  ;;  %v1262_v60 = vrot.slane %v1240_v42, %v2625_v9  ;;  %v1221_v61 = vmul.f32 %v1199_v47, %v2645_v37  ;;  %v1222_v20 = vmul.f32 %v1203_v46, %v2645_v37 }
  0xd2   : > { %v1269_v62 = vrot.slane %v1241_v52, %v2625_v9  ;;  %v1270_v4 = vcombine.high %v1248_v3, %v1248_v3  ;;  %v1277_v18 = vrot.slane %v1248_v3, %v2636_v25  ;;  %v2988_v15 = vpop.eup %2175  ;;  %v1223_v6 = vmul.f32 %v1207_v53, %v2645_v37 }
  0xd3   : > { %v1271_v21 = vcombine.high %v1255_v59, %v1255_v59  ;;  %v1272_v22 = vcombine.high %v1262_v60, %v1262_v60  ;;  %v2994_v0 = vpop.eup %2177  ;;  %v1281_v17 = vrot.slane %v1262_v60, %v2636_v25  ;;  %v1293_v10 = vrot.slane %v1255_v59, %v2636_v25 }
  0xd4   : > { %v1273_v12 = vcombine.high %v1269_v62, %v1269_v62  ;;  %v1285_v50 = vrot.slane %v1270_v4, %v2636_v25  ;;  %v1297_v27 = vrot.slane %v1269_v62, %v2636_v25  ;;  %v3002_v1 = vadd.f32 %v1277_v18, %v1216_v2 }
  0xd5   : > { %v1289_v16 = vrot.slane %v1272_v22, %v2636_v25  ;;  %v1301_v28 = vrot.slane %v1271_v21, %v2636_v25  ;;  %v3007_v31 = vadd.f32 %v1281_v17, %v1217_v48  ;;  %v3011_v35 = vadd.f32 %v1293_v10, %v1220_v11 }
  0xd6   : > { %v1305_v30 = vrot.slane %v1273_v12, %v2636_v25  ;;  %v3009_v32 = vadd.f32 %v1285_v50, %v1218_v51  ;;  %v3013_v36 = vpop.eup %2179  ;;  %v3017_v41 = vadd.f32 %v1297_v27, %v1221_v61  ;;  %v1322_v47 = vsel %vm553_vm0, %v3002_v1, -inf }
  0xd7   : > { %v3015_v39 = vadd.f32 %v1289_v16, %v1219_v54  ;;  %v3019_v42 = vadd.f32 %v1301_v28, %v1222_v20  ;;  %v1323_v53 = vsel %vm553_vm0, %v3007_v31, -inf  ;;  %v1326_v48 = vsel %vm553_vm0, %v3011_v35, -inf }
  0xd8   : > { %v3023_v46 = vadd.f32 %v1305_v30, %v1223_v6  ;;  %v1324_v2 = vsel %vm553_vm0, %v3009_v32, -inf  ;;  %v1327_v52 = vmax.f32 %v1322_v47, %v1326_v48  ;;  %v1328_v3 = vsel %vm553_vm0, %v3017_v41, -inf }
  0xd9   : > { %v1325_v51 = vsel %vm553_vm0, %v3015_v39, -inf  ;;  %v1330_v54 = vsel %vm553_vm0, %v3019_v42, -inf  ;;  %v1013_v11 = vcombine.high %v2936_v40, %v2936_v40  ;;  %v1329_v59 = vmax.f32 %v1323_v53, %v1328_v3 }
  0xda   : > { %v1331_v60 = vmax.f32 %v1324_v2, %v1330_v54  ;;  %v1332_v61 = vsel %vm553_vm0, %v3023_v46, -inf  ;;  %2181 = vpow2.f32 %v2941_v19  ;;  %v1027_v62 = vrot.slane %v2936_v40, %v2625_v9 }
  0xdb   : > { %v1333_v4 = vmax.f32 %v1325_v51, %v1332_v61  ;;  %v1504_v18 = vstv %s2992_s3  ;;  %v983_v20 = vadd.f32 %v982_v43, %v981_v55  ;;  %v1061_v6 = vrot.slane %v1044_v13, %v2636_v25 }
  0xdc   : > { %v1088_v21 = vmul.f32 %v2947_v23, %v2956_v24  ;;  %v1334_v22 = vmax.f32 %v1327_v52, %v1329_v59  ;;  %v984_v12 = vsel %vm553_vm0, %v2988_v15, 0.0  ;;  %v1094_v19 = vsel %vm553_vm0, %v2970_v44, 0.0 }
  0xdd   : > { %v1095_v40 = vsel %vm553_vm0, %v2972_v45, 0.0  ;;  %v1335_v17 = vmax.f32 %v1331_v60, %v1333_v4  ;;  %v3061_v43 = vsel %vm553_vm0, %v2898_v34, 0.0  ;;  %v1041_v7 = vrot.slane %v1013_v11, %v2625_v9 }
  0xde   : > { %v1043_v13 = vcombine.high %v1027_v62, %v1027_v62  ;;  %v1378_v55 = vstv %s3004_s27  ;;  %v605_v23 = vadd.f32 %v2891_v29, %v2923_v57  ;;  %v718_v24 = vadd.f32 %v2904_v56, %v2925_v58 }
  0xdf   : > { %v3071_v44 = vmax.f32 %v1334_v22, %v1335_v17  ;;  %v1505_v45 = vadd.f32 %v1504_v18, %v2933_v14  ;;  %v985_v50 = vadd.f32 %v984_v12, %v983_v20  ;;  %v1065_v34 = vrot.slane %v1027_v62, %v2636_v25 }
  0xe0   : > { %v1089_v10 = vmul.f32 %v2958_v26, %v1061_v6  ;;  %v1096_v16 = vadd.f32 %v1095_v40, %v1094_v19  ;;  %v3078_v27 = vsel %vm553_vm0, %v2901_v38, 0.0  ;;  %v986_v29 = vsel %vm553_vm0, %v2994_v0, 0.0 }
  0xe1   : > { %v1097_v57 = vsel %vm553_vm0, %v1088_v21, 0.0  ;;  %v1379_v56 = vadd.f32 %v1378_v55, %v2930_v63  ;;  %v1045_v58 = vcombine.high %v1041_v7, %v1041_v7  ;;  %v1069_v14 = vrot.slane %v1041_v7, %v2636_v25 }
  0xe2   : > { %v1073_v28 = vrot.slane %v1043_v13, %v2636_v25  ;;  %v1506_v30 = vstv %s3041_s17  ;;  %v607_v26 = vadd.f32 %v2896_v33, %v605_v23  ;;  %v3089_v47 = vadd.f32 %v2917_v49, %v718_v24 }
  0xe3   : > { %v1337_v38 = vsub.f32 %v3002_v1, %v3071_v44  ;;  %v1511_v53 = vcombine.high %v1505_v45, %v1505_v45  ;;  %v987_v2 = vadd.f32 %v986_v29, %v985_v50  ;;  %v1090_v48 = vmul.f32 %v2988_v15, %v1065_v34 }
  0xe4   : > { %v1098_v63 = vadd.f32 %v1097_v57, %v1096_v16  ;;  %v1099_v51 = vsel %vm553_vm0, %v1089_v10, 0.0  ;;  %v2182_v52 = vpop.eup %2181  ;;  %v988_v3 = vsel %vm553_vm0, %v3013_v36, 0.0  ;;  %v1381_v54 = vcombine.high %v1379_v56, %v1379_v56 }
  0xe5   : > { %v1388_v33 = vrot.slane %v1379_v56, %v2625_v9  ;;  %v1507_v49 = vmul.f32 %v1506_v30, %v2622_v5  ;;  %v1077_v11 = vrot.slane %v1045_v58, %v2636_v25  ;;  %v1091_v1 = vmul.f32 %v2994_v0, %v1069_v14 }
  0xe6   : > { %v1092_v59 = vmul.f32 %v3013_v36, %v1073_v28  ;;  %v1508_v60 = vstv %s3065_s7  ;;  %v1338_v15 = vsub.f32 %v3007_v31, %v3071_v44  ;;  %v1345_v61 = vmul.f32 1.442695, %v1337_v38 }
  0xe7   : > { %v1518_v62 = vrot.slane %v1505_v45, %v2625_v9  ;;  %v1525_v4 = vrot.slane %v1511_v53, %v2625_v9  ;;  %v989_v18 = vadd.f32 %v988_v3, %v987_v2  ;;  %v990_v20 = vsel %vm553_vm0, %v2182_v52, 0.0 }
  0xe8   : > { %v1100_v6 = vadd.f32 %v1099_v51, %v1098_v63  ;;  %v1101_v5 = vsel %vm553_vm0, %v1090_v48, 0.0  ;;  %v3110_v21 = vrot.slane %v1381_v54, %v2625_v9  ;;  %v1396_v0 = vcombine.high %v1388_v33, %v1388_v33 }
  0xe9   : > { %v3113_v36 = vrot.slane %v1388_v33, %v2625_v9  ;;  %v1509_v22 = vadd.f32 %v1508_v60, %v1507_v49  ;;  %2183 = vrcp.f32 %v607_v26  ;;  %v3115_v31 = vmul.f32 %v2182_v52, %v1077_v11 }
  0xea   : > { %v3118_v12 = vsel %vm553_vm0, %v1091_v1, 0.0  ;;  %v1526_v19 = vcombine.high %v1518_v62, %v1518_v62  ;;  %v1339_v40 = vsub.f32 %v3009_v32, %v3071_v44  ;;  %2185 = vpow2.f32 %v1345_v61 }
  0xeb   : > { %v1347_v17 = vmul.f32 1.442695, %v1338_v15  ;;  %v1527_v7 = vcombine.high %v1525_v4, %v1525_v4  ;;  %v3122_v13 = vadd.f32 %v990_v20, %v989_v18  ;;  %v3124_v55 = vadd.f32 %v1101_v5, %v1100_v6 }
  0xec   : > { %v3127_v23 = vsel %vm553_vm0, %v1092_v59, 0.0  ;;  %v1534_v24 = vrot.slane %v1518_v62, %v2625_v9  ;;  %v1397_v45 = vcombine.high %v3110_v21, %v3110_v21  ;;  %v3133_v50 = vrot.slane %v1396_v0, %v2625_v9 }
  0xed   : > { %v1426_v32 = vcombine.high %v3113_v36, %v3113_v36  ;;  %v1609_v34 = vcombine.high %v1509_v22, %v1509_v22  ;;  %v1340_v10 = vsub.f32 %v3015_v39, %v3071_v44  ;;  %v1341_v16 = vsub.f32 %v3011_v35, %v3071_v44 }
  0xee   : > { %v1541_v29 = vrot.slane %v1525_v4, %v2625_v9  ;;  %v1548_v57 = vrot.slane %v1526_v19, %v2625_v9  ;;  %2187 = vpow2.f32 %v1347_v17  ;;  %v1349_v56 = vmul.f32 1.442695, %v1339_v40 }
  0xef   : > { %v1433_v58 = vrot.slane %v3113_v36, %v2636_v25  ;;  %v1555_v14 = vrot.slane %v1527_v7, %v2625_v9  ;;  %v1342_v28 = vsub.f32 %v3017_v41, %v3071_v44  ;;  %v1343_v39 = vsub.f32 %v3019_v42, %v3071_v44 }
  0xf0   : > { %v1428_v35 = vcombine.high %v3133_v50, %v3133_v50  ;;  %v1556_v30 = vcombine.high %v1534_v24, %v1534_v24  ;;  %v1344_v26 = vsub.f32 %v3023_v46, %v3071_v44  ;;  %v1437_v38 = vrot.slane %v3133_v50, %v2636_v25 }
  0xf1   : > { %v1616_v53 = vrot.slane %v1509_v22, %v2625_v9  ;;  %v1623_v2 = vrot.slane %v1609_v34, %v2625_v9  ;;  %v1351_v48 = vmul.f32 1.442695, %v1340_v10  ;;  %v1353_v63 = vmul.f32 1.442695, %v1341_v16 }
  0xf2   : > { %v1557_v41 = vcombine.high %v1541_v29, %v1541_v29  ;;  %v1558_v51 = vcombine.high %v1548_v57, %v1548_v57  ;;  %2189 = vpow2.f32 %v1349_v56  ;;  %v1559_v42 = vcombine.high %v1555_v14, %v1555_v14 }
  0xf3   : > { %v1563_v52 = vrot.slane %v1534_v24, %v2636_v25  ;;  %v1579_v3 = vrot.slane %v1541_v29, %v2636_v25  ;;  %v3162_v54 = vpop.eup %2183  ;;  %v1355_v46 = vmul.f32 1.442695, %v1342_v28  ;;  %v3164_v44 = vmul.f32 1.442695, %v1343_v39 }
  0xf4   : > { %v1567_v33 = vrot.slane %v1548_v57, %v2636_v25  ;;  %v1571_v49 = vrot.slane %v1556_v30, %v2636_v25  ;;  %v3168_v11 = vpop.eup %2185  ;;  %v3170_v1 = vmul.f32 1.442695, %v1344_v26  ;;  %v1583_v59 = vrot.slane %v1555_v14, %v2636_v25  ;;  %v2223_v26 = vld [vmem:[%s289_s10] sm:$0xff]  ;;  %s1880_s10 = sld [smem:[#allocation2]] }
  0xf5   : > { %v1624_v60 = vcombine.high %v1616_v53, %v1616_v53  ;;  %v1625_v15 = vcombine.high %v1623_v2, %v1623_v2  ;;  %2191 = vpow2.f32 %v1351_v48  ;;  %v1575_v61 = vrot.slane %v1558_v51, %v2636_v25 }
  0xf6   : > { %v1587_v62 = vrot.slane %v1557_v41, %v2636_v25  ;;  %v1760_v4 = vstv %s3141_s8  ;;  %2193 = vpow2.f32 %v1353_v63  ;;  %v1591_v18 = vrot.slane %v1559_v42, %v2636_v25 }
  0xf7   : > { %v1600_v20 = vmul.f32 %v1563_v52, %v2645_v37  ;;  %v1604_v6 = vmul.f32 %v1579_v3, %v2645_v37  ;;  %v1361_v5 = vsel %vm553_vm0, %v3168_v11, 0.0  ;;  %v1601_v0 = vmul.f32 %v1567_v33, %v2645_v37 }
  0xf8   : > { %v1602_v22 = vmul.f32 %v1571_v49, %v2645_v37  ;;  %v1632_v19 = vrot.slane %v1616_v53, %v2625_v9  ;;  %v2188_v40 = vpop.eup %2187  ;;  %v1605_v17 = vmul.f32 %v1583_v59, %v2645_v37  ;;  %v1639_v7 = vrot.slane %v1623_v2, %v2625_v9 }
  0xf9   : > { %v1646_v24 = vrot.slane %v1624_v60, %v2625_v9  ;;  %v1653_v34 = vrot.slane %v1625_v15, %v2625_v9  ;;  %v1603_v10 = vmul.f32 %v1575_v61, %v2645_v37  ;;  %v1606_v16 = vmul.f32 %v1587_v62, %v2645_v37 }
  0xfa   : > { %v1654_v29 = vcombine.high %v1632_v19, %v1632_v19  ;;  %v1661_v57 = vrot.slane %v1632_v19, %v2636_v25  ;;  %v1655_v56 = vcombine.high %v1639_v7, %v1639_v7  ;;  %v1362_v30 = vsel %vm553_vm0, %v2188_v40, 0.0 }
  0xfb   : > { %v1656_v14 = vcombine.high %v1646_v24, %v1646_v24  ;;  %v1657_v28 = vcombine.high %v1653_v34, %v1653_v34  ;;  %v1665_v39 = vrot.slane %v1646_v24, %v2636_v25  ;;  %v1607_v53 = vmul.f32 %v2223_v26, %v1591_v18 }
  0xfc   : > { %v1669_v2 = vrot.slane %v1654_v29, %v2636_v25  ;;  %v1677_v48 = vrot.slane %v1639_v7, %v2636_v25  ;;  %v2190_v37 = vpop.eup %2189  ;;  %v1681_v41 = vrot.slane %v1653_v34, %v2636_v25  ;;  %v1685_v51 = vrot.slane %v1655_v56, %v2636_v25 }
  0xfd   : > { %v1673_v63 = vrot.slane %v1656_v14, %v2636_v25  ;;  %v1689_v42 = vrot.slane %v1657_v28, %v2636_v25  ;;  %2195 = vpow2.f32 %v1355_v46  ;;  %v1698_v52 = vadd.f32 %v1661_v57, %v1600_v20 }
  0xfe   : > { %v1699_v3 = vadd.f32 %v1665_v39, %v1601_v0  ;;  %v1761_v33 = vmul.f32 %v1760_v4, %v2686_v8  ;;  %v1700_v49 = vadd.f32 %v1669_v2, %v1602_v22  ;;  %v1702_v60 = vadd.f32 %v1677_v48, %v1604_v6 }
  0xff   : > { %v1701_v59 = vadd.f32 %v1673_v63, %v1603_v10  ;;  %v1703_v15 = vadd.f32 %v1681_v41, %v1605_v17  ;;  %v3204_v61 = vpop.eup %2191  ;;  %v1363_v62 = vadd.f32 %v1362_v30, %v1361_v5  ;;  %v1364_v18 = vsel %vm553_vm0, %v2190_v37, 0.0 }
 0x100   : > { %v3207_v19 = vadd.f32 %v1685_v51, %v1606_v16  ;;  %v3209_v7 = vadd.f32 %v1689_v42, %v1607_v53  ;;  %v3211_v24 = vpop.eup %2193  ;;  %v1706_v46 = vsel %vm553_vm0, %v1698_v52, -inf  ;;  %v1707_v8 = vsel %vm553_vm0, %v1699_v3, -inf }
 0x101   : > { %v1708_v4 = vsel %vm553_vm0, %v1700_v49, -inf  ;;  %v1709_v20 = vsel %vm553_vm0, %v1701_v59, -inf  ;;  %v1710_v6 = vsel %vm553_vm0, %v1702_v60, -inf  ;;  %v1712_v5 = vsel %vm553_vm0, %v1703_v15, -inf }
 0x102   : > { %v1714_v0 = vsel %vm553_vm0, %v3207_v19, -inf  ;;  %v1716_v22 = vsel %vm553_vm0, %v3209_v7, -inf  ;;  %v1711_v17 = vmax.f32 %v1706_v46, %v1710_v6  ;;  %v1713_v34 = vmax.f32 %v1707_v8, %v1712_v5 }
 0x103   : > { %v1715_v10 = vmax.f32 %v1708_v4, %v1714_v0  ;;  %v1717_v16 = vmax.f32 %v1709_v20, %v1716_v22  ;;  %v1365_v29 = vadd.f32 %v1364_v18, %v1363_v62  ;;  %v1470_v57 = vmul.f32 %v3168_v11, %v1433_v58 }
 0x104   : > { %v1471_v56 = vmul.f32 %v2188_v40, %v1437_v38  ;;  %v1762_v14 = vstv %s3193_s15  ;;  %2197 = vpow2.f32 %v3164_v44  ;;  %v1366_v28 = vsel %vm553_vm0, %v3204_v61, 0.0 }
 0x105   : > { %v1718_v39 = vmax.f32 %v1711_v17, %v1713_v34  ;;  %v1719_v30 = vmax.f32 %v1715_v10, %v1717_v16  ;;  %v3236_v26 = vadd.f32 %v3118_v12, %v3124_v55  ;;  %2199 = vrcp.f32 %v3122_v13 }
 0x106   : > { %v3241_v58 = vrot.slane %v3110_v21, %v2625_v9  ;;  %v1763_v11 = vadd.f32 %v1762_v14, %v1761_v33  ;;  %v3247_v38 = vrot.slane %v1397_v45, %v2625_v9  ;;  %v1441_v44 = vrot.slane %v1426_v32, %v2636_v25 }
 0x107   : > { %v1445_v12 = vrot.slane %v1428_v35, %v2636_v25  ;;  %v1720_v13 = vmax.f32 %v1718_v39, %v1719_v30  ;;  %v3257_v55 = vpop.eup %2195  ;;  %2201 = vpow2.f32 %v3170_v1  ;;  %v1367_v40 = vadd.f32 %v1366_v28, %v1365_v29 }
 0x108   : > { %v1478_v21 = vsel %vm553_vm0, %v1470_v57, 0.0  ;;  %v1479_v45 = vsel %vm553_vm0, %v1471_v56, 0.0  ;;  %v1368_v32 = vsel %vm553_vm0, %v3211_v24, 0.0  ;;  %v1772_v35 = vrot.slane %v1763_v11, %v2625_v9 }
 0x109   : > { %v1721_v53 = vsub.f32 %v1698_v52, %v1720_v13  ;;  %v1722_v2 = vsub.f32 %v1699_v3, %v1720_v13  ;;  %v1723_v48 = vsub.f32 %v1700_v49, %v1720_v13  ;;  %v1724_v36 = vsub.f32 %v1701_v59, %v1720_v13 }
 0x10a   : > { %v1725_v63 = vsub.f32 %v1702_v60, %v1720_v13  ;;  %v1726_v50 = vsub.f32 %v1703_v15, %v1720_v13  ;;  %v1472_v41 = vmul.f32 %v2190_v37, %v1441_v44  ;;  %v1370_v33 = vsel %vm553_vm0, %v3257_v55, 0.0 }
 0x10b   : > { %v1729_v51 = vmul.f32 1.442695, %v1721_v53  ;;  %v1731_v42 = vmul.f32 1.442695, %v1722_v2  ;;  %v1733_v1 = vmul.f32 1.442695, %v1723_v48  ;;  %v1727_v62 = vsub.f32 %v3207_v19, %v1720_v13 }
 0x10c   : > { %v1735_v52 = vmul.f32 1.442695, %v1724_v36  ;;  %v1765_v3 = vcombine.high %v1763_v11, %v1763_v11  ;;  %v1369_v49 = vadd.f32 %v1368_v32, %v1367_v40  ;;  %v1728_v59 = vsub.f32 %v3209_v7, %v1720_v13 }
 0x10d   : > { %2203 = vpow2.f32 %v1729_v51  ;;  %v1737_v18 = vmul.f32 1.442695, %v1725_v63  ;;  %v1739_v60 = vmul.f32 1.442695, %v1726_v50  ;;  %v1780_v15 = vcombine.high %v1772_v35, %v1772_v35 }
 0x10e   : > { %2205 = vpow2.f32 %v1731_v42  ;;  %v1788_v37 = vrot.slane %v1772_v35, %v2625_v9  ;;  %v3270_v46 = vpop.eup %2197  ;;  %v1427_v8 = vcombine.high %v3241_v58, %v3241_v58  ;;  %v1449_v19 = vrot.slane %v3241_v58, %v2636_v25 }
 0x10f   : > { %v1473_v4 = vmul.f32 %v3204_v61, %v1445_v12  ;;  %2207 = vpow2.f32 %v1733_v1  ;;  %v3277_v20 = vpop.eup %2199  ;;  %v1480_v7 = vadd.f32 %v1479_v45, %v1478_v21  ;;  %v1741_v6 = vmul.f32 1.442695, %v1727_v62 }
 0x110   : > { %2209 = vpow2.f32 %v1735_v52  ;;  %v1779_v5 = vrot.slane %v1765_v3, %v2625_v9  ;;  %v1371_v0 = vadd.f32 %v1370_v33, %v1369_v49  ;;  %v1481_v22 = vsel %vm553_vm0, %v1472_v41, 0.0 }
 0x111   : > { %2211 = vpow2.f32 %v1737_v18  ;;  %v1802_v17 = vrot.slane %v1780_v15, %v2625_v9  ;;  %v3282_v34 = vpop.eup %2201  ;;  %v1372_v10 = vsel %vm553_vm0, %v3270_v46, 0.0  ;;  %v1743_v61 = vmul.f32 1.442695, %v1728_v59 }
 0x112   : > { %2213 = vpow2.f32 %v1739_v60  ;;  %v1810_v16 = vcombine.high %v1788_v37, %v1788_v37  ;;  %v1429_v29 = vcombine.high %v3247_v38, %v3247_v38  ;;  %v1453_v57 = vrot.slane %v3247_v38, %v2636_v25 }
 0x113   : > { %v1474_v56 = vmul.f32 %v3211_v24, %v1449_v19  ;;  %v1812_v14 = vcombine.high %v1802_v17, %v1802_v17  ;;  %2215 = vpow2.f32 %v1741_v6  ;;  %v1781_v28 = vcombine.high %v1779_v5, %v1779_v5 }
 0x114   : > { %v1795_v39 = vrot.slane %v1779_v5, %v2625_v9  ;;  %v1817_v30 = vrot.slane %v1788_v37, %v2636_v25  ;;  %v1373_v58 = vadd.f32 %v1372_v10, %v1371_v0  ;;  %v1457_v11 = vrot.slane %v1427_v8, %v2636_v25 }
 0x115   : > { %v1482_v44 = vadd.f32 %v1481_v22, %v1480_v7  ;;  %v1821_v12 = vrot.slane %v1802_v17, %v2636_v25  ;;  %v1374_v13 = vsel %vm553_vm0, %v3282_v34, 0.0  ;;  %v1483_v38 = vsel %vm553_vm0, %v1473_v4, 0.0 }
 0x116   : > { %2217 = vpow2.f32 %v1743_v61  ;;  %v1825_v24 = vrot.slane %v1810_v16, %v2636_v25  ;;  %v1461_v21 = vrot.slane %v1429_v29, %v2636_v25  ;;  %v1475_v45 = vmul.f32 %v3257_v55, %v1453_v57 }
 0x117   : > { %v2204_v40 = vpop.eup %2203  ;;  %v1485_v53 = vsel %vm553_vm0, %v1474_v56, 0.0  ;;  %v1829_v2 = vrot.slane %v1812_v14, %v2636_v25  ;;  %v1809_v32 = vrot.slane %v1781_v28, %v2625_v9  ;;  %v1833_v63 = vrot.slane %v1795_v39, %v2636_v25 }
 0x118   : > { %v2206_v48 = vpop.eup %2205  ;;  %v1745_v36 = vsel %vm553_vm0, %v2204_v40, 0.0  ;;  %v1854_v50 = vmul.f32 %v2204_v40, %v1817_v30  ;;  %v1375_v41 = vadd.f32 %v1374_v13, %v1373_v58  ;;  %v1484_v51 = vadd.f32 %v1483_v38, %v1482_v44 }
 0x119   : > { %v2208_v35 = vpop.eup %2207  ;;  %v1746_v42 = vsel %vm553_vm0, %v2206_v48, 0.0  ;;  %v1855_v1 = vmul.f32 %v2206_v48, %v1821_v12  ;;  %v1811_v9 = vcombine.high %v1795_v39, %v1795_v39  ;;  %v1837_v8 = vrot.slane %v1809_v32, %v2636_v25 }
 0x11a   : > { %v2210_v33 = vpop.eup %2209  ;;  %v1747_v55 = vadd.f32 %v1746_v42, %v1745_v36  ;;  %v1748_v62 = vsel %vm553_vm0, %v2208_v35, 0.0  ;;  %v1856_v52 = vmul.f32 %v2208_v35, %v1825_v24  ;;  %v1862_v3 = vsel %vm553_vm0, %v1854_v50, 0.0 }
 0x11b   : > { %v2212_v49 = vpop.eup %2211  ;;  %v1750_v59 = vsel %vm553_vm0, %v2210_v33, 0.0  ;;  %v1857_v18 = vmul.f32 %v2210_v33, %v1829_v2  ;;  %v1863_v60 = vsel %vm553_vm0, %v1855_v1, 0.0  ;;  %v1486_v7 = vadd.f32 %v1485_v53, %v1484_v51 }
 0x11c   : > { %v2214_v15 = vpop.eup %2213  ;;  %v1749_v37 = vadd.f32 %v1748_v62, %v1747_v55  ;;  %v1858_v19 = vmul.f32 %v2212_v49, %v1833_v63  ;;  %v1864_v4 = vadd.f32 %v1863_v60, %v1862_v3  ;;  %v1752_v6 = vsel %vm553_vm0, %v2212_v49, 0.0 }
 0x11d   : > { %v1865_v5 = vsel %vm553_vm0, %v1856_v52, 0.0  ;;  %v1867_v0 = vsel %vm553_vm0, %v1857_v18, 0.0  ;;  %v2216_v22 = vpop.eup %2215  ;;  %v1476_v17 = vmul.f32 %v3270_v46, %v1457_v11  ;;  %v1487_v10 = vsel %vm553_vm0, %v1475_v45, 0.0 }
 0x11e   : > { %v1751_v61 = vadd.f32 %v1750_v59, %v1749_v37  ;;  %v1866_v16 = vadd.f32 %v1865_v5, %v1864_v4  ;;  %2219 = vrcp.f32 %v1375_v41  ;;  %v1754_v29 = vsel %vm553_vm0, %v2214_v15, 0.0 }
 0x11f   : > { %v1813_v57 = vcombine.high %v1809_v32, %v1809_v32  ;;  %v1841_v56 = vrot.slane %v1811_v9, %v2636_v25  ;;  %v1859_v39 = vmul.f32 %v2214_v15, %v1837_v8  ;;  %v1869_v58 = vsel %vm553_vm0, %v1858_v19, 0.0 }
 0x120   : > { %v2218_v14 = vpop.eup %2217  ;;  %v1753_v28 = vadd.f32 %v1752_v6, %v1751_v61  ;;  %v1868_v30 = vadd.f32 %v1867_v0, %v1866_v16  ;;  %v722_v44 = vadd.f32 %v3061_v43, %v3089_v47  ;;  %v1106_v46 = vadd.f32 %v3127_v23, %v3236_v26 }
 0x121   : > { %v1488_v11 = vadd.f32 %v1487_v10, %v1486_v7  ;;  %v1756_v12 = vsel %vm553_vm0, %v2216_v22, 0.0  ;;  %v1107_v13 = vsel %vm553_vm0, %v3115_v31, 0.0  ;;  %v1477_v38 = vmul.f32 %v3282_v34, %v1461_v21 }
 0x122   : > { %v1489_v24 = vsel %vm553_vm0, %v1476_v17, 0.0  ;;  %v1755_v40 = vadd.f32 %v1754_v29, %v1753_v28  ;;  %v1758_v45 = vsel %vm553_vm0, %v2218_v14, 0.0  ;;  %v1870_v53 = vadd.f32 %v1869_v58, %v1868_v30 }
 0x123   : > { %v1845_v43 = vrot.slane %v1813_v57, %v2636_v25  ;;  %v1860_v47 = vmul.f32 %v2216_v22, %v1841_v56  ;;  %v1871_v23 = vsel %vm553_vm0, %v1859_v39, 0.0  ;;  %v724_v26 = vadd.f32 %v3078_v27, %v722_v44 }
 0x124   : > { %v1757_v2 = vadd.f32 %v1756_v12, %v1755_v40  ;;  %v1108_v48 = vadd.f32 %v1107_v13, %v1106_v46  ;;  %v1490_v36 = vadd.f32 %v1489_v24, %v1488_v11  ;;  %v1491_v31 = vsel %vm553_vm0, %v1477_v38, 0.0 }
 0x125   : > { %v1872_v34 = vadd.f32 %v1871_v23, %v1870_v53  ;;  %v1861_v21 = vmul.f32 %v2218_v14, %v1845_v43  ;;  %v1873_v63 = vsel %vm553_vm0, %v1860_v47, 0.0  ;;  %v726_v25 = vmul.f32 %v3162_v54, %v724_v26 }
 0x126   : > { %v1759_v32 = vadd.f32 %v1758_v45, %v1757_v2  ;;  %v1110_v35 = vmul.f32 %v3277_v20, %v1108_v48  ;;  %v1492_v41 = vadd.f32 %v1491_v31, %v1490_v36  ;;  %v1881_v3 = vstv %s1880_s10 }
 0x127   : > { %v1874_v51 = vadd.f32 %v1873_v63, %v1872_v34  ;;  %v1875_v27 = vsel %vm553_vm0, %v1861_v21, 0.0 }
 0x128   : > { %2221 = vrcp.f32 %v1759_v32  ;;  %v2220_v50 = vpop.eup %2219  ;;  %v1111_v42 = vadd.f32 %v1110_v35, %v726_v25 }
 0x129   : > { %v1494_v1 = vmul.f32 %v2220_v50, %v1492_v41  ;;  %v1876_v33 = vadd.f32 %v1875_v27, %v1874_v51 }
 0x12b   : > { %v1495_v55 = vadd.f32 %v1494_v1, %v1111_v42 }
 0x132   : > { %v2222_v62 = vpop.eup %2221 }
 0x133   : > { %v1878_v52 = vmul.f32 %v2222_v62, %v1876_v33 }
 0x135   : > { %v1879_v54 = vadd.f32 %v1878_v52, %v1495_v55 }
 0x137   : > { %v1882_v49 = vadd.f32 %v1881_v3, %v1879_v54 }
 0x139   : > { %1883 = vst.msk [vmem:[%s332_s9] sm:$0xff] %vm553_vm0, %v1882_v49 }
 0x13a   : > { %2312 = shalt.err (!%p2309_p0)
}
 0x13b   : > { %s2313_s0 = scalar_lea.hbm %s3343_s6, 128  ;;  %s2317_s27 = scalar_lea.hbm %s3398_s5, 256 }
 0x13c   : > { %p2314_p4 = scmp.ne.s32.totalorder %s3343_s6, %s2313_s0  ;;  %p2318_p8 = scmp.lt.u32.totalorder %s3343_s6, %s3398_s5 }
 0x13d   : > { %p2319_p2 = scmp.lt.u32.totalorder %s2317_s27, %s2313_s0  ;;  %p2321_p13 = scmp.lt.u32.totalorder %s2313_s0, %s3343_s6 }
 0x13e   : > { %p2315_p9 = pnand %p2314_p4, %p3423_p11 }
 0x13f   : > { %p2320_p12 = por %p2319_p2, %p2318_p8 }
 0x140   : > { %p2316_p5 = pneg %p2315_p9 }
 0x141   : > { %p2322_p3 = por %p2321_p13, %p2320_p12 }
 0x143   : > { %p2323_p7 = pnand %p2322_p3, %p2316_p5 }
 0x145   : > { %2326 = shalt.err (!%p2323_p7)
}
 0x146   : > { %2080 = dma.vmem_to_hbm [thread:$0]  (%p3423_p11), %s3345_s28, 128, %s3343_s6, %s1885_s4  }
 0x147 PF: > { %s1911_s8 = sand.u32 1, %s2369_s20   ;;  %p3424_p10 = scmp.ne.s32.totalorder %s3411_s30, 0 }
 0x148   : > { %p3425_p6 = scmp.ge.s32.totalorder %s2389_s25, 2  ;;  %s1912_s15 = scalar_lea.sflag [#allocation5], %s1911_s8 }
 0x14a   : > { %p2094_p1 = pnand %p3425_p6, %p3424_p10 }
 0x14c   : > { %2364 = dma.done.wait (!%p2094_p1), %s1912_s15, 128  }
 0x14d   : > { %2366 = vsyncadd (!%p2094_p1), %s1912_s15, 4294967168  ;;  %s26_s25 = sadd.s32 1, %s2389_s25   ;;  %s3426_s16 = sld [smem:[#allocation15_spill]] }
 0x14e   : > { %p23_p0 = scmp.ge.s32.totalorder %s26_s25, 4   ;;  %s3427_s20 = smov %s2373_s21 }
 0x14f   : > { %s3428_s21 = smov %s2377_s22  ;;  %s3429_s22 = smov %s2523_s18 }
 0x150   : > { %s3430_s23 = smov %s2385_s24  ;;  %25 = sbr.rel (!%p23_p0) target bundleno = 13 (0xd), region = 106 }
 0x153   : > { %s3431_s24 = smov %s3426_s16 }
 0x157   :  { %1917 = vsyncpa [#allocation4], 1 }
 0x158   :  { %1919 = vsyncpa [#allocation4 + $0x1], 1 }
 0x159   :  { %1920 = vsyncpa [#allocation8], 1 }
 0x15a   :  { %1922 = vsyncpa [#allocation8 + $0x1], 1 }
 0x15b   :  { %1923 = vsyncpa [#allocation5], 1 }
 0x15c   :  { %1925 = vsyncpa [#allocation5 + $0x1], 1 }
 0x15d   :  { %1926 = vsyncpa [#allocation6], 1 }
 0x15e   :  { %1928 = vsyncpa [#allocation6 + $0x1], 1 }

</bundles_post_ra>
